<compile_context>
chip_gen: v6e
topology: v6e:2x2x1
jax: 0.10.0
libtpu: 0.0.40
codegen_flags: <defaults>
</compile_context>

<pallas_src>
import jax
import jax.numpy as jnp
from jax import lax
from jax.experimental import pallas as pl
from jax.experimental.pallas import tpu as pltpu
import numpy as np

# Small, self-consistent shapes (scaled down from embed_dim=hidden_dim=256).
S, B = 8, 2      # seq_len, batch
E = 32           # embed_dim
H = 32           # hidden_dim
VOCAB = 64       # stand-in for max_d (original comes from .mat files)


def bilstm_kernel(emb_ref, w_in_ref, b_ref, whh_ref, wp_ref, bp_ref, out_ref):
    # emb_ref : (S*B, E)         time-major, flattened over (S, B)
    # w_in_ref: (E, 8H)          [Wih_f | Wih_b]
    # b_ref   : (1, 8H)          [b_f   | b_b ]   (b_ih + b_hh merged)
    # whh_ref : (2H, 8H)         block-diag([Whh_f, Whh_b])
    # wp_ref  : (2H, 2)          [Wp_f ; Wp_b]
    # bp_ref  : (1, 2)
    # out_ref : (S, 2)
    s = out_ref.shape[0]
    sb = emb_ref.shape[0]
    b = sb // s
    h_dim = whh_ref.shape[0] // 2
    fh = 4 * h_dim

    # --- Hoisted input projection (both directions at once, bias folded) ---
    gates_x = (jnp.dot(emb_ref[...], w_in_ref[...],
                       preferred_element_type=jnp.float32)
               + b_ref[...])                                    # (S*B, 8H)

    whh = whh_ref[...]                                          # (2H, 8H)

    def cell(pre, c):
        # PyTorch LSTM gate order: i, f, g, o
        i_g = jax.nn.sigmoid(pre[:, 0:h_dim])
        f_g = jax.nn.sigmoid(pre[:, h_dim:2 * h_dim])
        g_g = jnp.tanh(pre[:, 2 * h_dim:3 * h_dim])
        o_g = jax.nn.sigmoid(pre[:, 3 * h_dim:4 * h_dim])
        c_new = f_g * c + i_g * g_g
        h_new = o_g * jnp.tanh(c_new)
        return h_new, c_new

    zeros = jnp.zeros((b, h_dim), jnp.float32)
    h_f, c_f = zeros, zeros
    h_b, c_b = zeros, zeros
    hf_rows = [None] * s          # batch-summed forward hidden per time step
    hb_rows = [None] * s          # batch-summed backward hidden per time step

    # --- Fused fwd/bwd recurrence, fully unrolled (S is static & small) ---
    for t in range(s):
        tb = s - 1 - t
        h_cat = jnp.concatenate([h_f, h_b], axis=1)             # (B, 2H)
        gates_h = jnp.dot(h_cat, whh,
                          preferred_element_type=jnp.float32)   # (B, 8H)
        pre_f = gates_x[t * b:(t + 1) * b, 0:fh] + gates_h[:, 0:fh]
        pre_b = gates_x[tb * b:(tb + 1) * b, fh:2 * fh] + gates_h[:, fh:2 * fh]
        h_f, c_f = cell(pre_f, c_f)
        h_b, c_b = cell(pre_b, c_b)
        # Sum over batch NOW (tanh is applied after the batch sum -> exact).
        hf_rows[t] = jnp.sum(h_f, axis=0, keepdims=True)        # (1, H)
        hb_rows[tb] = jnp.sum(h_b, axis=0, keepdims=True)       # (1, H)

    hf_hist = jnp.concatenate(hf_rows, axis=0)                  # (S, H)
    hb_hist = jnp.concatenate(hb_rows, axis=0)                  # (S, H)
    h_all = jnp.concatenate([hf_hist, hb_hist], axis=1)         # (S, 2H)

    # --- Projection on the batch-summed hiddens + tanh ---
    proj = (jnp.dot(h_all, wp_ref[...], preferred_element_type=jnp.float32)
            + float(b) * bp_ref[...])                           # (S, 2)
    out_ref[...] = jnp.tanh(proj)


def _pack_params(params):
    """Wrapper-side packing: fewer, larger operands into the kernel."""
    w_in = jnp.concatenate([params['wih_f'], params['wih_b']], axis=1)   # (E, 8H)
    b_all = jnp.concatenate([params['b_f'], params['b_b']], axis=1)      # (1, 8H)
    whh_bd = jnp.zeros((2 * H, 8 * H), jnp.float32)
    whh_bd = whh_bd.at[:H, :4 * H].set(params['whh_f'])
    whh_bd = whh_bd.at[H:, 4 * H:].set(params['whh_b'])                  # (2H, 8H)
    wp = jnp.concatenate([params['wp_f'], params['wp_b']], axis=0)       # (2H, 2)
    return w_in, b_all, whh_bd, wp, params['bp']


@jax.jit
def model_forward(x_idx, params):
    # Embedding lookup (gather) as plain-JAX glue.
    emb = params['embedding'][x_idx]                 # (S, B, E)
    emb2d = emb.reshape(S * B, E)
    w_in, b_all, whh_bd, wp, bp = _pack_params(params)

    args = (emb2d, w_in, b_all, whh_bd, wp, bp)
    vmem = lambda: pl.BlockSpec(memory_space=pltpu.MemorySpace.VMEM)
    return pl.pallas_call(
        bilstm_kernel,
        out_shape=jax.ShapeDtypeStruct((S, 2), jnp.float32),
        in_specs=[vmem() for _ in args],
        out_specs=vmem(),
    )(*args)


def reference_forward(x_idx, params):
    """Pure-JAX reference reproducing the PyTorch forward semantics."""
    emb = params['embedding'][x_idx]                 # (S, B, E)

    def run_dir(emb_seq, wih, whh, bias):
        def step(carry, x_t):
            h, c = carry
            gates = x_t @ wih + h @ whh + bias
            i = jax.nn.sigmoid(gates[:, :H])
            f = jax.nn.sigmoid(gates[:, H:2 * H])
            g = jnp.tanh(gates[:, 2 * H:3 * H])
            o = jax.nn.sigmoid(gates[:, 3 * H:])
            c = f * c + i * g
            h = o * jnp.tanh(c)
            return (h, c), h
        init = (jnp.zeros((B, H), jnp.float32), jnp.zeros((B, H), jnp.float32))
        _, hs = lax.scan(step, init, emb_seq)
        return hs

    hf = run_dir(emb, params['wih_f'], params['whh_f'], params['b_f'])
    hb = run_dir(emb[::-1], params['wih_b'], params['whh_b'], params['b_b'])[::-1]
    out = hf @ params['wp_f'] + hb @ params['wp_b'] + params['bp']
    return jnp.tanh(jnp.sum(out, axis=1))


if __name__ == "__main__":
    key = jax.random.PRNGKey(0)
    keys = jax.random.split(key, 12)
    bound = 1.0 / np.sqrt(H)

    def u(kk, shape):
        return jax.random.uniform(kk, shape, jnp.float32, -bound, bound)

    params = {
        'embedding': jax.random.normal(keys[0], (VOCAB, E), jnp.float32),
        # weights stored transposed relative to PyTorch: (in, 4H) so x @ W works
        'wih_f': u(keys[1], (E, 4 * H)),
        'whh_f': u(keys[2], (H, 4 * H)),
        'b_f':   u(keys[3], (1, 4 * H)),   # b_ih + b_hh merged
        'wih_b': u(keys[4], (E, 4 * H)),
        'whh_b': u(keys[5], (H, 4 * H)),
        'b_b':   u(keys[6], (1, 4 * H)),
        # projection Linear(2H, 2) split into forward / backward halves
        'wp_f':  u(keys[7], (H, 2)),
        'wp_b':  u(keys[8], (H, 2)),
        'bp':    u(keys[9], (1, 2)),
    }

    x = jax.random.randint(keys[10], (S, B), 0, VOCAB, dtype=jnp.int32)

    scores = jax.block_until_ready(model_forward(x, params))
    ref = reference_forward(x, params)
    np.testing.assert_allclose(np.asarray(scores), np.asarray(ref),
                               atol=2e-5, rtol=2e-5)
    print("KERNEL_OK")
</pallas_src>

<mosaic_0001>
module attributes {stable_mosaic.version = 11 : i64} {
  func.func @bilstm_kernel(%arg0: memref<16x32xf32, #tpu.memory_space<vmem>>, %arg1: memref<32x256xf32, #tpu.memory_space<vmem>>, %arg2: memref<1x256xf32, #tpu.memory_space<vmem>>, %arg3: memref<64x256xf32, #tpu.memory_space<vmem>>, %arg4: memref<64x2xf32, #tpu.memory_space<vmem>>, %arg5: memref<1x2xf32, #tpu.memory_space<vmem>>, %arg6: memref<8x2xf32, #tpu.memory_space<vmem>>) attributes {dimension_semantics = [], scalar_prefetch = 0 : i64, scratch_operands = 0 : i64, tpu.core_type = #tpu.core_type<tc>} {
    %c0 = arith.constant 0 : index
    %c0_0 = arith.constant 0 : index
    %0 = vector.load %arg0[%c0, %c0_0] : memref<16x32xf32, #tpu.memory_space<vmem>>, vector<16x32xf32>
    %c0_1 = arith.constant 0 : index
    %c0_2 = arith.constant 0 : index
    %1 = vector.load %arg1[%c0_1, %c0_2] : memref<32x256xf32, #tpu.memory_space<vmem>>, vector<32x256xf32>
    %cst = arith.constant dense<0.000000e+00> : vector<16x256xf32>
    %2 = tpu.matmul %0, %1, %cst {dimension_numbers = #tpu.dot_dimension_numbers<[1], [0], [0], [1], [0, 0, 1, 1], [], []>} : vector<16x32xf32>, vector<32x256xf32>, vector<16x256xf32> -> vector<16x256xf32>
    %c0_3 = arith.constant 0 : index
    %c0_4 = arith.constant 0 : index
    %3 = vector.load %arg2[%c0_3, %c0_4] : memref<1x256xf32, #tpu.memory_space<vmem>>, vector<1x256xf32>
    %4 = vector.broadcast %3 : vector<1x256xf32> to vector<16x256xf32>
    %5 = arith.addf %2, %4 : vector<16x256xf32>
    %c0_5 = arith.constant 0 : index
    %c0_6 = arith.constant 0 : index
    %6 = vector.load %arg3[%c0_5, %c0_6] : memref<64x256xf32, #tpu.memory_space<vmem>>, vector<64x256xf32>
    %cst_7 = arith.constant 0.000000e+00 : f32
    %7 = vector.broadcast %cst_7 : f32 to vector<2x32xf32>
    %8 = tpu.concatenate %7, %7 in 1 : vector<2x32xf32>, vector<2x32xf32> -> vector<2x64xf32>
    %cst_8 = arith.constant dense<0.000000e+00> : vector<2x256xf32>
    %9 = tpu.matmul %8, %6, %cst_8 {dimension_numbers = #tpu.dot_dimension_numbers<[1], [0], [0], [1], [0, 0, 1, 1], [], []>} : vector<2x64xf32>, vector<64x256xf32>, vector<2x256xf32> -> vector<2x256xf32>
    %10 = vector.extract_strided_slice %5 {offsets = [0, 0], sizes = [2, 128], strides = [1, 1]} : vector<16x256xf32> to vector<2x128xf32>
    %11 = vector.extract_strided_slice %9 {offsets = [0, 0], sizes = [2, 128], strides = [1, 1]} : vector<2x256xf32> to vector<2x128xf32>
    %12 = arith.addf %10, %11 : vector<2x128xf32>
    %13 = vector.extract_strided_slice %5 {offsets = [14, 128], sizes = [2, 128], strides = [1, 1]} : vector<16x256xf32> to vector<2x128xf32>
    %14 = vector.extract_strided_slice %9 {offsets = [0, 128], sizes = [2, 128], strides = [1, 1]} : vector<2x256xf32> to vector<2x128xf32>
    %15 = arith.addf %13, %14 : vector<2x128xf32>
    %16 = vector.extract_strided_slice %12 {offsets = [0, 0], sizes = [2, 32], strides = [1, 1]} : vector<2x128xf32> to vector<2x32xf32>
    %17 = arith.negf %16 : vector<2x32xf32>
    %18 = math.exp %17 : vector<2x32xf32>
    %cst_9 = arith.constant 1.000000e+00 : f32
    %19 = vector.broadcast %cst_9 : f32 to vector<2x32xf32>
    %20 = arith.addf %19, %18 : vector<2x32xf32>
    %21 = arith.divf %19, %20 : vector<2x32xf32>
    %22 = vector.extract_strided_slice %12 {offsets = [0, 32], sizes = [2, 32], strides = [1, 1]} : vector<2x128xf32> to vector<2x32xf32>
    %23 = arith.negf %22 : vector<2x32xf32>
    %24 = math.exp %23 : vector<2x32xf32>
    %cst_10 = arith.constant 1.000000e+00 : f32
    %25 = vector.broadcast %cst_10 : f32 to vector<2x32xf32>
    %26 = arith.addf %25, %24 : vector<2x32xf32>
    %27 = arith.divf %25, %26 : vector<2x32xf32>
    %28 = vector.extract_strided_slice %12 {offsets = [0, 64], sizes = [2, 32], strides = [1, 1]} : vector<2x128xf32> to vector<2x32xf32>
    %29 = math.tanh %28 : vector<2x32xf32>
    %30 = vector.extract_strided_slice %12 {offsets = [0, 96], sizes = [2, 32], strides = [1, 1]} : vector<2x128xf32> to vector<2x32xf32>
    %31 = arith.negf %30 : vector<2x32xf32>
    %32 = math.exp %31 : vector<2x32xf32>
    %cst_11 = arith.constant 1.000000e+00 : f32
    %33 = vector.broadcast %cst_11 : f32 to vector<2x32xf32>
    %34 = arith.addf %33, %32 : vector<2x32xf32>
    %35 = arith.divf %33, %34 : vector<2x32xf32>
    %36 = arith.mulf %27, %7 : vector<2x32xf32>
    %37 = arith.mulf %21, %29 : vector<2x32xf32>
    %38 = arith.addf %36, %37 : vector<2x32xf32>
    %39 = math.tanh %38 : vector<2x32xf32>
    %40 = arith.mulf %35, %39 : vector<2x32xf32>
    %41 = vector.extract_strided_slice %15 {offsets = [0, 0], sizes = [2, 32], strides = [1, 1]} : vector<2x128xf32> to vector<2x32xf32>
    %42 = arith.negf %41 : vector<2x32xf32>
    %43 = math.exp %42 : vector<2x32xf32>
    %cst_12 = arith.constant 1.000000e+00 : f32
    %44 = vector.broadcast %cst_12 : f32 to vector<2x32xf32>
    %45 = arith.addf %44, %43 : vector<2x32xf32>
    %46 = arith.divf %44, %45 : vector<2x32xf32>
    %47 = vector.extract_strided_slice %15 {offsets = [0, 32], sizes = [2, 32], strides = [1, 1]} : vector<2x128xf32> to vector<2x32xf32>
    %48 = arith.negf %47 : vector<2x32xf32>
    %49 = math.exp %48 : vector<2x32xf32>
    %cst_13 = arith.constant 1.000000e+00 : f32
    %50 = vector.broadcast %cst_13 : f32 to vector<2x32xf32>
    %51 = arith.addf %50, %49 : vector<2x32xf32>
    %52 = arith.divf %50, %51 : vector<2x32xf32>
    %53 = vector.extract_strided_slice %15 {offsets = [0, 64], sizes = [2, 32], strides = [1, 1]} : vector<2x128xf32> to vector<2x32xf32>
    %54 = math.tanh %53 : vector<2x32xf32>
    %55 = vector.extract_strided_slice %15 {offsets = [0, 96], sizes = [2, 32], strides = [1, 1]} : vector<2x128xf32> to vector<2x32xf32>
    %56 = arith.negf %55 : vector<2x32xf32>
    %57 = math.exp %56 : vector<2x32xf32>
    %cst_14 = arith.constant 1.000000e+00 : f32
    %58 = vector.broadcast %cst_14 : f32 to vector<2x32xf32>
    %59 = arith.addf %58, %57 : vector<2x32xf32>
    %60 = arith.divf %58, %59 : vector<2x32xf32>
    %61 = arith.mulf %52, %7 : vector<2x32xf32>
    %62 = arith.mulf %46, %54 : vector<2x32xf32>
    %63 = arith.addf %61, %62 : vector<2x32xf32>
    %64 = math.tanh %63 : vector<2x32xf32>
    %65 = arith.mulf %60, %64 : vector<2x32xf32>
    %cst_15 = arith.constant dense<0.000000e+00> : vector<32xf32>
    %66 = vector.multi_reduction <add>, %40, %cst_15 [0] : vector<2x32xf32> to vector<32xf32>
    %67 = vector.shape_cast %66 : vector<32xf32> to vector<1x32xf32>
    %cst_16 = arith.constant dense<0.000000e+00> : vector<32xf32>
    %68 = vector.multi_reduction <add>, %65, %cst_16 [0] : vector<2x32xf32> to vector<32xf32>
    %69 = vector.shape_cast %68 : vector<32xf32> to vector<1x32xf32>
    %70 = tpu.concatenate %40, %65 in 1 : vector<2x32xf32>, vector<2x32xf32> -> vector<2x64xf32>
    %cst_17 = arith.constant dense<0.000000e+00> : vector<2x256xf32>
    %71 = tpu.matmul %70, %6, %cst_17 {dimension_numbers = #tpu.dot_dimension_numbers<[1], [0], [0], [1], [0, 0, 1, 1], [], []>} : vector<2x64xf32>, vector<64x256xf32>, vector<2x256xf32> -> vector<2x256xf32>
    %72 = vector.extract_strided_slice %5 {offsets = [2, 0], sizes = [2, 128], strides = [1, 1]} : vector<16x256xf32> to vector<2x128xf32>
    %73 = vector.extract_strided_slice %71 {offsets = [0, 0], sizes = [2, 128], strides = [1, 1]} : vector<2x256xf32> to vector<2x128xf32>
    %74 = arith.addf %72, %73 : vector<2x128xf32>
    %75 = vector.extract_strided_slice %5 {offsets = [12, 128], sizes = [2, 128], strides = [1, 1]} : vector<16x256xf32> to vector<2x128xf32>
    %76 = vector.extract_strided_slice %71 {offsets = [0, 128], sizes = [2, 128], strides = [1, 1]} : vector<2x256xf32> to vector<2x128xf32>
    %77 = arith.addf %75, %76 : vector<2x128xf32>
    %78 = vector.extract_strided_slice %74 {offsets = [0, 0], sizes = [2, 32], strides = [1, 1]} : vector<2x128xf32> to vector<2x32xf32>
    %79 = arith.negf %78 : vector<2x32xf32>
    %80 = math.exp %79 : vector<2x32xf32>
    %cst_18 = arith.constant 1.000000e+00 : f32
    %81 = vector.broadcast %cst_18 : f32 to vector<2x32xf32>
    %82 = arith.addf %81, %80 : vector<2x32xf32>
    %83 = arith.divf %81, %82 : vector<2x32xf32>
    %84 = vector.extract_strided_slice %74 {offsets = [0, 32], sizes = [2, 32], strides = [1, 1]} : vector<2x128xf32> to vector<2x32xf32>
    %85 = arith.negf %84 : vector<2x32xf32>
    %86 = math.exp %85 : vector<2x32xf32>
    %cst_19 = arith.constant 1.000000e+00 : f32
    %87 = vector.broadcast %cst_19 : f32 to vector<2x32xf32>
    %88 = arith.addf %87, %86 : vector<2x32xf32>
    %89 = arith.divf %87, %88 : vector<2x32xf32>
    %90 = vector.extract_strided_slice %74 {offsets = [0, 64], sizes = [2, 32], strides = [1, 1]} : vector<2x128xf32> to vector<2x32xf32>
    %91 = math.tanh %90 : vector<2x32xf32>
    %92 = vector.extract_strided_slice %74 {offsets = [0, 96], sizes = [2, 32], strides = [1, 1]} : vector<2x128xf32> to vector<2x32xf32>
    %93 = arith.negf %92 : vector<2x32xf32>
    %94 = math.exp %93 : vector<2x32xf32>
    %cst_20 = arith.constant 1.000000e+00 : f32
    %95 = vector.broadcast %cst_20 : f32 to vector<2x32xf32>
    %96 = arith.addf %95, %94 : vector<2x32xf32>
    %97 = arith.divf %95, %96 : vector<2x32xf32>
    %98 = arith.mulf %89, %38 : vector<2x32xf32>
    %99 = arith.mulf %83, %91 : vector<2x32xf32>
    %100 = arith.addf %98, %99 : vector<2x32xf32>
    %101 = math.tanh %100 : vector<2x32xf32>
    %102 = arith.mulf %97, %101 : vector<2x32xf32>
    %103 = vector.extract_strided_slice %77 {offsets = [0, 0], sizes = [2, 32], strides = [1, 1]} : vector<2x128xf32> to vector<2x32xf32>
    %104 = arith.negf %103 : vector<2x32xf32>
    %105 = math.exp %104 : vector<2x32xf32>
    %cst_21 = arith.constant 1.000000e+00 : f32
    %106 = vector.broadcast %cst_21 : f32 to vector<2x32xf32>
    %107 = arith.addf %106, %105 : vector<2x32xf32>
    %108 = arith.divf %106, %107 : vector<2x32xf32>
    %109 = vector.extract_strided_slice %77 {offsets = [0, 32], sizes = [2, 32], strides = [1, 1]} : vector<2x128xf32> to vector<2x32xf32>
    %110 = arith.negf %109 : vector<2x32xf32>
    %111 = math.exp %110 : vector<2x32xf32>
    %cst_22 = arith.constant 1.000000e+00 : f32
    %112 = vector.broadcast %cst_22 : f32 to vector<2x32xf32>
    %113 = arith.addf %112, %111 : vector<2x32xf32>
    %114 = arith.divf %112, %113 : vector<2x32xf32>
    %115 = vector.extract_strided_slice %77 {offsets = [0, 64], sizes = [2, 32], strides = [1, 1]} : vector<2x128xf32> to vector<2x32xf32>
    %116 = math.tanh %115 : vector<2x32xf32>
    %117 = vector.extract_strided_slice %77 {offsets = [0, 96], sizes = [2, 32], strides = [1, 1]} : vector<2x128xf32> to vector<2x32xf32>
    %118 = arith.negf %117 : vector<2x32xf32>
    %119 = math.exp %118 : vector<2x32xf32>
    %cst_23 = arith.constant 1.000000e+00 : f32
    %120 = vector.broadcast %cst_23 : f32 to vector<2x32xf32>
    %121 = arith.addf %120, %119 : vector<2x32xf32>
    %122 = arith.divf %120, %121 : vector<2x32xf32>
    %123 = arith.mulf %114, %63 : vector<2x32xf32>
    %124 = arith.mulf %108, %116 : vector<2x32xf32>
    %125 = arith.addf %123, %124 : vector<2x32xf32>
    %126 = math.tanh %125 : vector<2x32xf32>
    %127 = arith.mulf %122, %126 : vector<2x32xf32>
    %cst_24 = arith.constant dense<0.000000e+00> : vector<32xf32>
    %128 = vector.multi_reduction <add>, %102, %cst_24 [0] : vector<2x32xf32> to vector<32xf32>
    %129 = vector.shape_cast %128 : vector<32xf32> to vector<1x32xf32>
    %cst_25 = arith.constant dense<0.000000e+00> : vector<32xf32>
    %130 = vector.multi_reduction <add>, %127, %cst_25 [0] : vector<2x32xf32> to vector<32xf32>
    %131 = vector.shape_cast %130 : vector<32xf32> to vector<1x32xf32>
    %132 = tpu.concatenate %102, %127 in 1 : vector<2x32xf32>, vector<2x32xf32> -> vector<2x64xf32>
    %cst_26 = arith.constant dense<0.000000e+00> : vector<2x256xf32>
    %133 = tpu.matmul %132, %6, %cst_26 {dimension_numbers = #tpu.dot_dimension_numbers<[1], [0], [0], [1], [0, 0, 1, 1], [], []>} : vector<2x64xf32>, vector<64x256xf32>, vector<2x256xf32> -> vector<2x256xf32>
    %134 = vector.extract_strided_slice %5 {offsets = [4, 0], sizes = [2, 128], strides = [1, 1]} : vector<16x256xf32> to vector<2x128xf32>
    %135 = vector.extract_strided_slice %133 {offsets = [0, 0], sizes = [2, 128], strides = [1, 1]} : vector<2x256xf32> to vector<2x128xf32>
    %136 = arith.addf %134, %135 : vector<2x128xf32>
    %137 = vector.extract_strided_slice %5 {offsets = [10, 128], sizes = [2, 128], strides = [1, 1]} : vector<16x256xf32> to vector<2x128xf32>
    %138 = vector.extract_strided_slice %133 {offsets = [0, 128], sizes = [2, 128], strides = [1, 1]} : vector<2x256xf32> to vector<2x128xf32>
    %139 = arith.addf %137, %138 : vector<2x128xf32>
    %140 = vector.extract_strided_slice %136 {offsets = [0, 0], sizes = [2, 32], strides = [1, 1]} : vector<2x128xf32> to vector<2x32xf32>
    %141 = arith.negf %140 : vector<2x32xf32>
    %142 = math.exp %141 : vector<2x32xf32>
    %cst_27 = arith.constant 1.000000e+00 : f32
    %143 = vector.broadcast %cst_27 : f32 to vector<2x32xf32>
    %144 = arith.addf %143, %142 : vector<2x32xf32>
    %145 = arith.divf %143, %144 : vector<2x32xf32>
    %146 = vector.extract_strided_slice %136 {offsets = [0, 32], sizes = [2, 32], strides = [1, 1]} : vector<2x128xf32> to vector<2x32xf32>
    %147 = arith.negf %146 : vector<2x32xf32>
    %148 = math.exp %147 : vector<2x32xf32>
    %cst_28 = arith.constant 1.000000e+00 : f32
    %149 = vector.broadcast %cst_28 : f32 to vector<2x32xf32>
    %150 = arith.addf %149, %148 : vector<2x32xf32>
    %151 = arith.divf %149, %150 : vector<2x32xf32>
    %152 = vector.extract_strided_slice %136 {offsets = [0, 64], sizes = [2, 32], strides = [1, 1]} : vector<2x128xf32> to vector<2x32xf32>
    %153 = math.tanh %152 : vector<2x32xf32>
    %154 = vector.extract_strided_slice %136 {offsets = [0, 96], sizes = [2, 32], strides = [1, 1]} : vector<2x128xf32> to vector<2x32xf32>
    %155 = arith.negf %154 : vector<2x32xf32>
    %156 = math.exp %155 : vector<2x32xf32>
    %cst_29 = arith.constant 1.000000e+00 : f32
    %157 = vector.broadcast %cst_29 : f32 to vector<2x32xf32>
    %158 = arith.addf %157, %156 : vector<2x32xf32>
    %159 = arith.divf %157, %158 : vector<2x32xf32>
    %160 = arith.mulf %151, %100 : vector<2x32xf32>
    %161 = arith.mulf %145, %153 : vector<2x32xf32>
    %162 = arith.addf %160, %161 : vector<2x32xf32>
    %163 = math.tanh %162 : vector<2x32xf32>
    %164 = arith.mulf %159, %163 : vector<2x32xf32>
    %165 = vector.extract_strided_slice %139 {offsets = [0, 0], sizes = [2, 32], strides = [1, 1]} : vector<2x128xf32> to vector<2x32xf32>
    %166 = arith.negf %165 : vector<2x32xf32>
    %167 = math.exp %166 : vector<2x32xf32>
    %cst_30 = arith.constant 1.000000e+00 : f32
    %168 = vector.broadcast %cst_30 : f32 to vector<2x32xf32>
    %169 = arith.addf %168, %167 : vector<2x32xf32>
    %170 = arith.divf %168, %169 : vector<2x32xf32>
    %171 = vector.extract_strided_slice %139 {offsets = [0, 32], sizes = [2, 32], strides = [1, 1]} : vector<2x128xf32> to vector<2x32xf32>
    %172 = arith.negf %171 : vector<2x32xf32>
    %173 = math.exp %172 : vector<2x32xf32>
    %cst_31 = arith.constant 1.000000e+00 : f32
    %174 = vector.broadcast %cst_31 : f32 to vector<2x32xf32>
    %175 = arith.addf %174, %173 : vector<2x32xf32>
    %176 = arith.divf %174, %175 : vector<2x32xf32>
    %177 = vector.extract_strided_slice %139 {offsets = [0, 64], sizes = [2, 32], strides = [1, 1]} : vector<2x128xf32> to vector<2x32xf32>
    %178 = math.tanh %177 : vector<2x32xf32>
    %179 = vector.extract_strided_slice %139 {offsets = [0, 96], sizes = [2, 32], strides = [1, 1]} : vector<2x128xf32> to vector<2x32xf32>
    %180 = arith.negf %179 : vector<2x32xf32>
    %181 = math.exp %180 : vector<2x32xf32>
    %cst_32 = arith.constant 1.000000e+00 : f32
    %182 = vector.broadcast %cst_32 : f32 to vector<2x32xf32>
    %183 = arith.addf %182, %181 : vector<2x32xf32>
    %184 = arith.divf %182, %183 : vector<2x32xf32>
    %185 = arith.mulf %176, %125 : vector<2x32xf32>
    %186 = arith.mulf %170, %178 : vector<2x32xf32>
    %187 = arith.addf %185, %186 : vector<2x32xf32>
    %188 = math.tanh %187 : vector<2x32xf32>
    %189 = arith.mulf %184, %188 : vector<2x32xf32>
    %cst_33 = arith.constant dense<0.000000e+00> : vector<32xf32>
    %190 = vector.multi_reduction <add>, %164, %cst_33 [0] : vector<2x32xf32> to vector<32xf32>
    %191 = vector.shape_cast %190 : vector<32xf32> to vector<1x32xf32>
    %cst_34 = arith.constant dense<0.000000e+00> : vector<32xf32>
    %192 = vector.multi_reduction <add>, %189, %cst_34 [0] : vector<2x32xf32> to vector<32xf32>
    %193 = vector.shape_cast %192 : vector<32xf32> to vector<1x32xf32>
    %194 = tpu.concatenate %164, %189 in 1 : vector<2x32xf32>, vector<2x32xf32> -> vector<2x64xf32>
    %cst_35 = arith.constant dense<0.000000e+00> : vector<2x256xf32>
    %195 = tpu.matmul %194, %6, %cst_35 {dimension_numbers = #tpu.dot_dimension_numbers<[1], [0], [0], [1], [0, 0, 1, 1], [], []>} : vector<2x64xf32>, vector<64x256xf32>, vector<2x256xf32> -> vector<2x256xf32>
    %196 = vector.extract_strided_slice %5 {offsets = [6, 0], sizes = [2, 128], strides = [1, 1]} : vector<16x256xf32> to vector<2x128xf32>
    %197 = vector.extract_strided_slice %195 {offsets = [0, 0], sizes = [2, 128], strides = [1, 1]} : vector<2x256xf32> to vector<2x128xf32>
    %198 = arith.addf %196, %197 : vector<2x128xf32>
    %199 = vector.extract_strided_slice %5 {offsets = [8, 128], sizes = [2, 128], strides = [1, 1]} : vector<16x256xf32> to vector<2x128xf32>
    %200 = vector.extract_strided_slice %195 {offsets = [0, 128], sizes = [2, 128], strides = [1, 1]} : vector<2x256xf32> to vector<2x128xf32>
    %201 = arith.addf %199, %200 : vector<2x128xf32>
    %202 = vector.extract_strided_slice %198 {offsets = [0, 0], sizes = [2, 32], strides = [1, 1]} : vector<2x128xf32> to vector<2x32xf32>
    %203 = arith.negf %202 : vector<2x32xf32>
    %204 = math.exp %203 : vector<2x32xf32>
    %cst_36 = arith.constant 1.000000e+00 : f32
    %205 = vector.broadcast %cst_36 : f32 to vector<2x32xf32>
    %206 = arith.addf %205, %204 : vector<2x32xf32>
    %207 = arith.divf %205, %206 : vector<2x32xf32>
    %208 = vector.extract_strided_slice %198 {offsets = [0, 32], sizes = [2, 32], strides = [1, 1]} : vector<2x128xf32> to vector<2x32xf32>
    %209 = arith.negf %208 : vector<2x32xf32>
    %210 = math.exp %209 : vector<2x32xf32>
    %cst_37 = arith.constant 1.000000e+00 : f32
    %211 = vector.broadcast %cst_37 : f32 to vector<2x32xf32>
    %212 = arith.addf %211, %210 : vector<2x32xf32>
    %213 = arith.divf %211, %212 : vector<2x32xf32>
    %214 = vector.extract_strided_slice %198 {offsets = [0, 64], sizes = [2, 32], strides = [1, 1]} : vector<2x128xf32> to vector<2x32xf32>
    %215 = math.tanh %214 : vector<2x32xf32>
    %216 = vector.extract_strided_slice %198 {offsets = [0, 96], sizes = [2, 32], strides = [1, 1]} : vector<2x128xf32> to vector<2x32xf32>
    %217 = arith.negf %216 : vector<2x32xf32>
    %218 = math.exp %217 : vector<2x32xf32>
    %cst_38 = arith.constant 1.000000e+00 : f32
    %219 = vector.broadcast %cst_38 : f32 to vector<2x32xf32>
    %220 = arith.addf %219, %218 : vector<2x32xf32>
    %221 = arith.divf %219, %220 : vector<2x32xf32>
    %222 = arith.mulf %213, %162 : vector<2x32xf32>
    %223 = arith.mulf %207, %215 : vector<2x32xf32>
    %224 = arith.addf %222, %223 : vector<2x32xf32>
    %225 = math.tanh %224 : vector<2x32xf32>
    %226 = arith.mulf %221, %225 : vector<2x32xf32>
    %227 = vector.extract_strided_slice %201 {offsets = [0, 0], sizes = [2, 32], strides = [1, 1]} : vector<2x128xf32> to vector<2x32xf32>
    %228 = arith.negf %227 : vector<2x32xf32>
    %229 = math.exp %228 : vector<2x32xf32>
    %cst_39 = arith.constant 1.000000e+00 : f32
    %230 = vector.broadcast %cst_39 : f32 to vector<2x32xf32>
    %231 = arith.addf %230, %229 : vector<2x32xf32>
    %232 = arith.divf %230, %231 : vector<2x32xf32>
    %233 = vector.extract_strided_slice %201 {offsets = [0, 32], sizes = [2, 32], strides = [1, 1]} : vector<2x128xf32> to vector<2x32xf32>
    %234 = arith.negf %233 : vector<2x32xf32>
    %235 = math.exp %234 : vector<2x32xf32>
    %cst_40 = arith.constant 1.000000e+00 : f32
    %236 = vector.broadcast %cst_40 : f32 to vector<2x32xf32>
    %237 = arith.addf %236, %235 : vector<2x32xf32>
    %238 = arith.divf %236, %237 : vector<2x32xf32>
    %239 = vector.extract_strided_slice %201 {offsets = [0, 64], sizes = [2, 32], strides = [1, 1]} : vector<2x128xf32> to vector<2x32xf32>
    %240 = math.tanh %239 : vector<2x32xf32>
    %241 = vector.extract_strided_slice %201 {offsets = [0, 96], sizes = [2, 32], strides = [1, 1]} : vector<2x128xf32> to vector<2x32xf32>
    %242 = arith.negf %241 : vector<2x32xf32>
    %243 = math.exp %242 : vector<2x32xf32>
    %cst_41 = arith.constant 1.000000e+00 : f32
    %244 = vector.broadcast %cst_41 : f32 to vector<2x32xf32>
    %245 = arith.addf %244, %243 : vector<2x32xf32>
    %246 = arith.divf %244, %245 : vector<2x32xf32>
    %247 = arith.mulf %238, %187 : vector<2x32xf32>
    %248 = arith.mulf %232, %240 : vector<2x32xf32>
    %249 = arith.addf %247, %248 : vector<2x32xf32>
    %250 = math.tanh %249 : vector<2x32xf32>
    %251 = arith.mulf %246, %250 : vector<2x32xf32>
    %cst_42 = arith.constant dense<0.000000e+00> : vector<32xf32>
    %252 = vector.multi_reduction <add>, %226, %cst_42 [0] : vector<2x32xf32> to vector<32xf32>
    %253 = vector.shape_cast %252 : vector<32xf32> to vector<1x32xf32>
    %cst_43 = arith.constant dense<0.000000e+00> : vector<32xf32>
    %254 = vector.multi_reduction <add>, %251, %cst_43 [0] : vector<2x32xf32> to vector<32xf32>
    %255 = vector.shape_cast %254 : vector<32xf32> to vector<1x32xf32>
    %256 = tpu.concatenate %226, %251 in 1 : vector<2x32xf32>, vector<2x32xf32> -> vector<2x64xf32>
    %cst_44 = arith.constant dense<0.000000e+00> : vector<2x256xf32>
    %257 = tpu.matmul %256, %6, %cst_44 {dimension_numbers = #tpu.dot_dimension_numbers<[1], [0], [0], [1], [0, 0, 1, 1], [], []>} : vector<2x64xf32>, vector<64x256xf32>, vector<2x256xf32> -> vector<2x256xf32>
    %258 = vector.extract_strided_slice %5 {offsets = [8, 0], sizes = [2, 128], strides = [1, 1]} : vector<16x256xf32> to vector<2x128xf32>
    %259 = vector.extract_strided_slice %257 {offsets = [0, 0], sizes = [2, 128], strides = [1, 1]} : vector<2x256xf32> to vector<2x128xf32>
    %260 = arith.addf %258, %259 : vector<2x128xf32>
    %261 = vector.extract_strided_slice %5 {offsets = [6, 128], sizes = [2, 128], strides = [1, 1]} : vector<16x256xf32> to vector<2x128xf32>
    %262 = vector.extract_strided_slice %257 {offsets = [0, 128], sizes = [2, 128], strides = [1, 1]} : vector<2x256xf32> to vector<2x128xf32>
    %263 = arith.addf %261, %262 : vector<2x128xf32>
    %264 = vector.extract_strided_slice %260 {offsets = [0, 0], sizes = [2, 32], strides = [1, 1]} : vector<2x128xf32> to vector<2x32xf32>
    %265 = arith.negf %264 : vector<2x32xf32>
    %266 = math.exp %265 : vector<2x32xf32>
    %cst_45 = arith.constant 1.000000e+00 : f32
    %267 = vector.broadcast %cst_45 : f32 to vector<2x32xf32>
    %268 = arith.addf %267, %266 : vector<2x32xf32>
    %269 = arith.divf %267, %268 : vector<2x32xf32>
    %270 = vector.extract_strided_slice %260 {offsets = [0, 32], sizes = [2, 32], strides = [1, 1]} : vector<2x128xf32> to vector<2x32xf32>
    %271 = arith.negf %270 : vector<2x32xf32>
    %272 = math.exp %271 : vector<2x32xf32>
    %cst_46 = arith.constant 1.000000e+00 : f32
    %273 = vector.broadcast %cst_46 : f32 to vector<2x32xf32>
    %274 = arith.addf %273, %272 : vector<2x32xf32>
    %275 = arith.divf %273, %274 : vector<2x32xf32>
    %276 = vector.extract_strided_slice %260 {offsets = [0, 64], sizes = [2, 32], strides = [1, 1]} : vector<2x128xf32> to vector<2x32xf32>
    %277 = math.tanh %276 : vector<2x32xf32>
    %278 = vector.extract_strided_slice %260 {offsets = [0, 96], sizes = [2, 32], strides = [1, 1]} : vector<2x128xf32> to vector<2x32xf32>
    %279 = arith.negf %278 : vector<2x32xf32>
    %280 = math.exp %279 : vector<2x32xf32>
    %cst_47 = arith.constant 1.000000e+00 : f32
    %281 = vector.broadcast %cst_47 : f32 to vector<2x32xf32>
    %282 = arith.addf %281, %280 : vector<2x32xf32>
    %283 = arith.divf %281, %282 : vector<2x32xf32>
    %284 = arith.mulf %275, %224 : vector<2x32xf32>
    %285 = arith.mulf %269, %277 : vector<2x32xf32>
    %286 = arith.addf %284, %285 : vector<2x32xf32>
    %287 = math.tanh %286 : vector<2x32xf32>
    %288 = arith.mulf %283, %287 : vector<2x32xf32>
    %289 = vector.extract_strided_slice %263 {offsets = [0, 0], sizes = [2, 32], strides = [1, 1]} : vector<2x128xf32> to vector<2x32xf32>
    %290 = arith.negf %289 : vector<2x32xf32>
    %291 = math.exp %290 : vector<2x32xf32>
    %cst_48 = arith.constant 1.000000e+00 : f32
    %292 = vector.broadcast %cst_48 : f32 to vector<2x32xf32>
    %293 = arith.addf %292, %291 : vector<2x32xf32>
    %294 = arith.divf %292, %293 : vector<2x32xf32>
    %295 = vector.extract_strided_slice %263 {offsets = [0, 32], sizes = [2, 32], strides = [1, 1]} : vector<2x128xf32> to vector<2x32xf32>
    %296 = arith.negf %295 : vector<2x32xf32>
    %297 = math.exp %296 : vector<2x32xf32>
    %cst_49 = arith.constant 1.000000e+00 : f32
    %298 = vector.broadcast %cst_49 : f32 to vector<2x32xf32>
    %299 = arith.addf %298, %297 : vector<2x32xf32>
    %300 = arith.divf %298, %299 : vector<2x32xf32>
    %301 = vector.extract_strided_slice %263 {offsets = [0, 64], sizes = [2, 32], strides = [1, 1]} : vector<2x128xf32> to vector<2x32xf32>
    %302 = math.tanh %301 : vector<2x32xf32>
    %303 = vector.extract_strided_slice %263 {offsets = [0, 96], sizes = [2, 32], strides = [1, 1]} : vector<2x128xf32> to vector<2x32xf32>
    %304 = arith.negf %303 : vector<2x32xf32>
    %305 = math.exp %304 : vector<2x32xf32>
    %cst_50 = arith.constant 1.000000e+00 : f32
    %306 = vector.broadcast %cst_50 : f32 to vector<2x32xf32>
    %307 = arith.addf %306, %305 : vector<2x32xf32>
    %308 = arith.divf %306, %307 : vector<2x32xf32>
    %309 = arith.mulf %300, %249 : vector<2x32xf32>
    %310 = arith.mulf %294, %302 : vector<2x32xf32>
    %311 = arith.addf %309, %310 : vector<2x32xf32>
    %312 = math.tanh %311 : vector<2x32xf32>
    %313 = arith.mulf %308, %312 : vector<2x32xf32>
    %cst_51 = arith.constant dense<0.000000e+00> : vector<32xf32>
    %314 = vector.multi_reduction <add>, %288, %cst_51 [0] : vector<2x32xf32> to vector<32xf32>
    %315 = vector.shape_cast %314 : vector<32xf32> to vector<1x32xf32>
    %cst_52 = arith.constant dense<0.000000e+00> : vector<32xf32>
    %316 = vector.multi_reduction <add>, %313, %cst_52 [0] : vector<2x32xf32> to vector<32xf32>
    %317 = vector.shape_cast %316 : vector<32xf32> to vector<1x32xf32>
    %318 = tpu.concatenate %288, %313 in 1 : vector<2x32xf32>, vector<2x32xf32> -> vector<2x64xf32>
    %cst_53 = arith.constant dense<0.000000e+00> : vector<2x256xf32>
    %319 = tpu.matmul %318, %6, %cst_53 {dimension_numbers = #tpu.dot_dimension_numbers<[1], [0], [0], [1], [0, 0, 1, 1], [], []>} : vector<2x64xf32>, vector<64x256xf32>, vector<2x256xf32> -> vector<2x256xf32>
    %320 = vector.extract_strided_slice %5 {offsets = [10, 0], sizes = [2, 128], strides = [1, 1]} : vector<16x256xf32> to vector<2x128xf32>
    %321 = vector.extract_strided_slice %319 {offsets = [0, 0], sizes = [2, 128], strides = [1, 1]} : vector<2x256xf32> to vector<2x128xf32>
    %322 = arith.addf %320, %321 : vector<2x128xf32>
    %323 = vector.extract_strided_slice %5 {offsets = [4, 128], sizes = [2, 128], strides = [1, 1]} : vector<16x256xf32> to vector<2x128xf32>
    %324 = vector.extract_strided_slice %319 {offsets = [0, 128], sizes = [2, 128], strides = [1, 1]} : vector<2x256xf32> to vector<2x128xf32>
    %325 = arith.addf %323, %324 : vector<2x128xf32>
    %326 = vector.extract_strided_slice %322 {offsets = [0, 0], sizes = [2, 32], strides = [1, 1]} : vector<2x128xf32> to vector<2x32xf32>
    %327 = arith.negf %326 : vector<2x32xf32>
    %328 = math.exp %327 : vector<2x32xf32>
    %cst_54 = arith.constant 1.000000e+00 : f32
    %329 = vector.broadcast %cst_54 : f32 to vector<2x32xf32>
    %330 = arith.addf %329, %328 : vector<2x32xf32>
    %331 = arith.divf %329, %330 : vector<2x32xf32>
    %332 = vector.extract_strided_slice %322 {offsets = [0, 32], sizes = [2, 32], strides = [1, 1]} : vector<2x128xf32> to vector<2x32xf32>
    %333 = arith.negf %332 : vector<2x32xf32>
    %334 = math.exp %333 : vector<2x32xf32>
    %cst_55 = arith.constant 1.000000e+00 : f32
    %335 = vector.broadcast %cst_55 : f32 to vector<2x32xf32>
    %336 = arith.addf %335, %334 : vector<2x32xf32>
    %337 = arith.divf %335, %336 : vector<2x32xf32>
    %338 = vector.extract_strided_slice %322 {offsets = [0, 64], sizes = [2, 32], strides = [1, 1]} : vector<2x128xf32> to vector<2x32xf32>
    %339 = math.tanh %338 : vector<2x32xf32>
    %340 = vector.extract_strided_slice %322 {offsets = [0, 96], sizes = [2, 32], strides = [1, 1]} : vector<2x128xf32> to vector<2x32xf32>
    %341 = arith.negf %340 : vector<2x32xf32>
    %342 = math.exp %341 : vector<2x32xf32>
    %cst_56 = arith.constant 1.000000e+00 : f32
    %343 = vector.broadcast %cst_56 : f32 to vector<2x32xf32>
    %344 = arith.addf %343, %342 : vector<2x32xf32>
    %345 = arith.divf %343, %344 : vector<2x32xf32>
    %346 = arith.mulf %337, %286 : vector<2x32xf32>
    %347 = arith.mulf %331, %339 : vector<2x32xf32>
    %348 = arith.addf %346, %347 : vector<2x32xf32>
    %349 = math.tanh %348 : vector<2x32xf32>
    %350 = arith.mulf %345, %349 : vector<2x32xf32>
    %351 = vector.extract_strided_slice %325 {offsets = [0, 0], sizes = [2, 32], strides = [1, 1]} : vector<2x128xf32> to vector<2x32xf32>
    %352 = arith.negf %351 : vector<2x32xf32>
    %353 = math.exp %352 : vector<2x32xf32>
    %cst_57 = arith.constant 1.000000e+00 : f32
    %354 = vector.broadcast %cst_57 : f32 to vector<2x32xf32>
    %355 = arith.addf %354, %353 : vector<2x32xf32>
    %356 = arith.divf %354, %355 : vector<2x32xf32>
    %357 = vector.extract_strided_slice %325 {offsets = [0, 32], sizes = [2, 32], strides = [1, 1]} : vector<2x128xf32> to vector<2x32xf32>
    %358 = arith.negf %357 : vector<2x32xf32>
    %359 = math.exp %358 : vector<2x32xf32>
    %cst_58 = arith.constant 1.000000e+00 : f32
    %360 = vector.broadcast %cst_58 : f32 to vector<2x32xf32>
    %361 = arith.addf %360, %359 : vector<2x32xf32>
    %362 = arith.divf %360, %361 : vector<2x32xf32>
    %363 = vector.extract_strided_slice %325 {offsets = [0, 64], sizes = [2, 32], strides = [1, 1]} : vector<2x128xf32> to vector<2x32xf32>
    %364 = math.tanh %363 : vector<2x32xf32>
    %365 = vector.extract_strided_slice %325 {offsets = [0, 96], sizes = [2, 32], strides = [1, 1]} : vector<2x128xf32> to vector<2x32xf32>
    %366 = arith.negf %365 : vector<2x32xf32>
    %367 = math.exp %366 : vector<2x32xf32>
    %cst_59 = arith.constant 1.000000e+00 : f32
    %368 = vector.broadcast %cst_59 : f32 to vector<2x32xf32>
    %369 = arith.addf %368, %367 : vector<2x32xf32>
    %370 = arith.divf %368, %369 : vector<2x32xf32>
    %371 = arith.mulf %362, %311 : vector<2x32xf32>
    %372 = arith.mulf %356, %364 : vector<2x32xf32>
    %373 = arith.addf %371, %372 : vector<2x32xf32>
    %374 = math.tanh %373 : vector<2x32xf32>
    %375 = arith.mulf %370, %374 : vector<2x32xf32>
    %cst_60 = arith.constant dense<0.000000e+00> : vector<32xf32>
    %376 = vector.multi_reduction <add>, %350, %cst_60 [0] : vector<2x32xf32> to vector<32xf32>
    %377 = vector.shape_cast %376 : vector<32xf32> to vector<1x32xf32>
    %cst_61 = arith.constant dense<0.000000e+00> : vector<32xf32>
    %378 = vector.multi_reduction <add>, %375, %cst_61 [0] : vector<2x32xf32> to vector<32xf32>
    %379 = vector.shape_cast %378 : vector<32xf32> to vector<1x32xf32>
    %380 = tpu.concatenate %350, %375 in 1 : vector<2x32xf32>, vector<2x32xf32> -> vector<2x64xf32>
    %cst_62 = arith.constant dense<0.000000e+00> : vector<2x256xf32>
    %381 = tpu.matmul %380, %6, %cst_62 {dimension_numbers = #tpu.dot_dimension_numbers<[1], [0], [0], [1], [0, 0, 1, 1], [], []>} : vector<2x64xf32>, vector<64x256xf32>, vector<2x256xf32> -> vector<2x256xf32>
    %382 = vector.extract_strided_slice %5 {offsets = [12, 0], sizes = [2, 128], strides = [1, 1]} : vector<16x256xf32> to vector<2x128xf32>
    %383 = vector.extract_strided_slice %381 {offsets = [0, 0], sizes = [2, 128], strides = [1, 1]} : vector<2x256xf32> to vector<2x128xf32>
    %384 = arith.addf %382, %383 : vector<2x128xf32>
    %385 = vector.extract_strided_slice %5 {offsets = [2, 128], sizes = [2, 128], strides = [1, 1]} : vector<16x256xf32> to vector<2x128xf32>
    %386 = vector.extract_strided_slice %381 {offsets = [0, 128], sizes = [2, 128], strides = [1, 1]} : vector<2x256xf32> to vector<2x128xf32>
    %387 = arith.addf %385, %386 : vector<2x128xf32>
    %388 = vector.extract_strided_slice %384 {offsets = [0, 0], sizes = [2, 32], strides = [1, 1]} : vector<2x128xf32> to vector<2x32xf32>
    %389 = arith.negf %388 : vector<2x32xf32>
    %390 = math.exp %389 : vector<2x32xf32>
    %cst_63 = arith.constant 1.000000e+00 : f32
    %391 = vector.broadcast %cst_63 : f32 to vector<2x32xf32>
    %392 = arith.addf %391, %390 : vector<2x32xf32>
    %393 = arith.divf %391, %392 : vector<2x32xf32>
    %394 = vector.extract_strided_slice %384 {offsets = [0, 32], sizes = [2, 32], strides = [1, 1]} : vector<2x128xf32> to vector<2x32xf32>
    %395 = arith.negf %394 : vector<2x32xf32>
    %396 = math.exp %395 : vector<2x32xf32>
    %cst_64 = arith.constant 1.000000e+00 : f32
    %397 = vector.broadcast %cst_64 : f32 to vector<2x32xf32>
    %398 = arith.addf %397, %396 : vector<2x32xf32>
    %399 = arith.divf %397, %398 : vector<2x32xf32>
    %400 = vector.extract_strided_slice %384 {offsets = [0, 64], sizes = [2, 32], strides = [1, 1]} : vector<2x128xf32> to vector<2x32xf32>
    %401 = math.tanh %400 : vector<2x32xf32>
    %402 = vector.extract_strided_slice %384 {offsets = [0, 96], sizes = [2, 32], strides = [1, 1]} : vector<2x128xf32> to vector<2x32xf32>
    %403 = arith.negf %402 : vector<2x32xf32>
    %404 = math.exp %403 : vector<2x32xf32>
    %cst_65 = arith.constant 1.000000e+00 : f32
    %405 = vector.broadcast %cst_65 : f32 to vector<2x32xf32>
    %406 = arith.addf %405, %404 : vector<2x32xf32>
    %407 = arith.divf %405, %406 : vector<2x32xf32>
    %408 = arith.mulf %399, %348 : vector<2x32xf32>
    %409 = arith.mulf %393, %401 : vector<2x32xf32>
    %410 = arith.addf %408, %409 : vector<2x32xf32>
    %411 = math.tanh %410 : vector<2x32xf32>
    %412 = arith.mulf %407, %411 : vector<2x32xf32>
    %413 = vector.extract_strided_slice %387 {offsets = [0, 0], sizes = [2, 32], strides = [1, 1]} : vector<2x128xf32> to vector<2x32xf32>
    %414 = arith.negf %413 : vector<2x32xf32>
    %415 = math.exp %414 : vector<2x32xf32>
    %cst_66 = arith.constant 1.000000e+00 : f32
    %416 = vector.broadcast %cst_66 : f32 to vector<2x32xf32>
    %417 = arith.addf %416, %415 : vector<2x32xf32>
    %418 = arith.divf %416, %417 : vector<2x32xf32>
    %419 = vector.extract_strided_slice %387 {offsets = [0, 32], sizes = [2, 32], strides = [1, 1]} : vector<2x128xf32> to vector<2x32xf32>
    %420 = arith.negf %419 : vector<2x32xf32>
    %421 = math.exp %420 : vector<2x32xf32>
    %cst_67 = arith.constant 1.000000e+00 : f32
    %422 = vector.broadcast %cst_67 : f32 to vector<2x32xf32>
    %423 = arith.addf %422, %421 : vector<2x32xf32>
    %424 = arith.divf %422, %423 : vector<2x32xf32>
    %425 = vector.extract_strided_slice %387 {offsets = [0, 64], sizes = [2, 32], strides = [1, 1]} : vector<2x128xf32> to vector<2x32xf32>
    %426 = math.tanh %425 : vector<2x32xf32>
    %427 = vector.extract_strided_slice %387 {offsets = [0, 96], sizes = [2, 32], strides = [1, 1]} : vector<2x128xf32> to vector<2x32xf32>
    %428 = arith.negf %427 : vector<2x32xf32>
    %429 = math.exp %428 : vector<2x32xf32>
    %cst_68 = arith.constant 1.000000e+00 : f32
    %430 = vector.broadcast %cst_68 : f32 to vector<2x32xf32>
    %431 = arith.addf %430, %429 : vector<2x32xf32>
    %432 = arith.divf %430, %431 : vector<2x32xf32>
    %433 = arith.mulf %424, %373 : vector<2x32xf32>
    %434 = arith.mulf %418, %426 : vector<2x32xf32>
    %435 = arith.addf %433, %434 : vector<2x32xf32>
    %436 = math.tanh %435 : vector<2x32xf32>
    %437 = arith.mulf %432, %436 : vector<2x32xf32>
    %cst_69 = arith.constant dense<0.000000e+00> : vector<32xf32>
    %438 = vector.multi_reduction <add>, %412, %cst_69 [0] : vector<2x32xf32> to vector<32xf32>
    %439 = vector.shape_cast %438 : vector<32xf32> to vector<1x32xf32>
    %cst_70 = arith.constant dense<0.000000e+00> : vector<32xf32>
    %440 = vector.multi_reduction <add>, %437, %cst_70 [0] : vector<2x32xf32> to vector<32xf32>
    %441 = vector.shape_cast %440 : vector<32xf32> to vector<1x32xf32>
    %442 = tpu.concatenate %412, %437 in 1 : vector<2x32xf32>, vector<2x32xf32> -> vector<2x64xf32>
    %cst_71 = arith.constant dense<0.000000e+00> : vector<2x256xf32>
    %443 = tpu.matmul %442, %6, %cst_71 {dimension_numbers = #tpu.dot_dimension_numbers<[1], [0], [0], [1], [0, 0, 1, 1], [], []>} : vector<2x64xf32>, vector<64x256xf32>, vector<2x256xf32> -> vector<2x256xf32>
    %444 = vector.extract_strided_slice %5 {offsets = [14, 0], sizes = [2, 128], strides = [1, 1]} : vector<16x256xf32> to vector<2x128xf32>
    %445 = vector.extract_strided_slice %443 {offsets = [0, 0], sizes = [2, 128], strides = [1, 1]} : vector<2x256xf32> to vector<2x128xf32>
    %446 = arith.addf %444, %445 : vector<2x128xf32>
    %447 = vector.extract_strided_slice %5 {offsets = [0, 128], sizes = [2, 128], strides = [1, 1]} : vector<16x256xf32> to vector<2x128xf32>
    %448 = vector.extract_strided_slice %443 {offsets = [0, 128], sizes = [2, 128], strides = [1, 1]} : vector<2x256xf32> to vector<2x128xf32>
    %449 = arith.addf %447, %448 : vector<2x128xf32>
    %450 = vector.extract_strided_slice %446 {offsets = [0, 0], sizes = [2, 32], strides = [1, 1]} : vector<2x128xf32> to vector<2x32xf32>
    %451 = arith.negf %450 : vector<2x32xf32>
    %452 = math.exp %451 : vector<2x32xf32>
    %cst_72 = arith.constant 1.000000e+00 : f32
    %453 = vector.broadcast %cst_72 : f32 to vector<2x32xf32>
    %454 = arith.addf %453, %452 : vector<2x32xf32>
    %455 = arith.divf %453, %454 : vector<2x32xf32>
    %456 = vector.extract_strided_slice %446 {offsets = [0, 32], sizes = [2, 32], strides = [1, 1]} : vector<2x128xf32> to vector<2x32xf32>
    %457 = arith.negf %456 : vector<2x32xf32>
    %458 = math.exp %457 : vector<2x32xf32>
    %cst_73 = arith.constant 1.000000e+00 : f32
    %459 = vector.broadcast %cst_73 : f32 to vector<2x32xf32>
    %460 = arith.addf %459, %458 : vector<2x32xf32>
    %461 = arith.divf %459, %460 : vector<2x32xf32>
    %462 = vector.extract_strided_slice %446 {offsets = [0, 64], sizes = [2, 32], strides = [1, 1]} : vector<2x128xf32> to vector<2x32xf32>
    %463 = math.tanh %462 : vector<2x32xf32>
    %464 = vector.extract_strided_slice %446 {offsets = [0, 96], sizes = [2, 32], strides = [1, 1]} : vector<2x128xf32> to vector<2x32xf32>
    %465 = arith.negf %464 : vector<2x32xf32>
    %466 = math.exp %465 : vector<2x32xf32>
    %cst_74 = arith.constant 1.000000e+00 : f32
    %467 = vector.broadcast %cst_74 : f32 to vector<2x32xf32>
    %468 = arith.addf %467, %466 : vector<2x32xf32>
    %469 = arith.divf %467, %468 : vector<2x32xf32>
    %470 = arith.mulf %461, %410 : vector<2x32xf32>
    %471 = arith.mulf %455, %463 : vector<2x32xf32>
    %472 = arith.addf %470, %471 : vector<2x32xf32>
    %473 = math.tanh %472 : vector<2x32xf32>
    %474 = arith.mulf %469, %473 : vector<2x32xf32>
    %475 = vector.extract_strided_slice %449 {offsets = [0, 0], sizes = [2, 32], strides = [1, 1]} : vector<2x128xf32> to vector<2x32xf32>
    %476 = arith.negf %475 : vector<2x32xf32>
    %477 = math.exp %476 : vector<2x32xf32>
    %cst_75 = arith.constant 1.000000e+00 : f32
    %478 = vector.broadcast %cst_75 : f32 to vector<2x32xf32>
    %479 = arith.addf %478, %477 : vector<2x32xf32>
    %480 = arith.divf %478, %479 : vector<2x32xf32>
    %481 = vector.extract_strided_slice %449 {offsets = [0, 32], sizes = [2, 32], strides = [1, 1]} : vector<2x128xf32> to vector<2x32xf32>
    %482 = arith.negf %481 : vector<2x32xf32>
    %483 = math.exp %482 : vector<2x32xf32>
    %cst_76 = arith.constant 1.000000e+00 : f32
    %484 = vector.broadcast %cst_76 : f32 to vector<2x32xf32>
    %485 = arith.addf %484, %483 : vector<2x32xf32>
    %486 = arith.divf %484, %485 : vector<2x32xf32>
    %487 = vector.extract_strided_slice %449 {offsets = [0, 64], sizes = [2, 32], strides = [1, 1]} : vector<2x128xf32> to vector<2x32xf32>
    %488 = math.tanh %487 : vector<2x32xf32>
    %489 = vector.extract_strided_slice %449 {offsets = [0, 96], sizes = [2, 32], strides = [1, 1]} : vector<2x128xf32> to vector<2x32xf32>
    %490 = arith.negf %489 : vector<2x32xf32>
    %491 = math.exp %490 : vector<2x32xf32>
    %cst_77 = arith.constant 1.000000e+00 : f32
    %492 = vector.broadcast %cst_77 : f32 to vector<2x32xf32>
    %493 = arith.addf %492, %491 : vector<2x32xf32>
    %494 = arith.divf %492, %493 : vector<2x32xf32>
    %495 = arith.mulf %486, %435 : vector<2x32xf32>
    %496 = arith.mulf %480, %488 : vector<2x32xf32>
    %497 = arith.addf %495, %496 : vector<2x32xf32>
    %498 = math.tanh %497 : vector<2x32xf32>
    %499 = arith.mulf %494, %498 : vector<2x32xf32>
    %cst_78 = arith.constant dense<0.000000e+00> : vector<32xf32>
    %500 = vector.multi_reduction <add>, %474, %cst_78 [0] : vector<2x32xf32> to vector<32xf32>
    %501 = vector.shape_cast %500 : vector<32xf32> to vector<1x32xf32>
    %cst_79 = arith.constant dense<0.000000e+00> : vector<32xf32>
    %502 = vector.multi_reduction <add>, %499, %cst_79 [0] : vector<2x32xf32> to vector<32xf32>
    %503 = vector.shape_cast %502 : vector<32xf32> to vector<1x32xf32>
    %504 = tpu.concatenate %67, %129, %191, %253, %315, %377, %439, %501 in 0 : vector<1x32xf32>, vector<1x32xf32>, vector<1x32xf32>, vector<1x32xf32>, vector<1x32xf32>, vector<1x32xf32>, vector<1x32xf32>, vector<1x32xf32> -> vector<8x32xf32>
    %505 = tpu.concatenate %503, %441, %379, %317, %255, %193, %131, %69 in 0 : vector<1x32xf32>, vector<1x32xf32>, vector<1x32xf32>, vector<1x32xf32>, vector<1x32xf32>, vector<1x32xf32>, vector<1x32xf32>, vector<1x32xf32> -> vector<8x32xf32>
    %506 = tpu.concatenate %504, %505 in 1 : vector<8x32xf32>, vector<8x32xf32> -> vector<8x64xf32>
    %c0_80 = arith.constant 0 : index
    %c0_81 = arith.constant 0 : index
    %507 = vector.load %arg4[%c0_80, %c0_81] : memref<64x2xf32, #tpu.memory_space<vmem>>, vector<64x2xf32>
    %cst_82 = arith.constant dense<0.000000e+00> : vector<8x2xf32>
    %508 = tpu.matmul %506, %507, %cst_82 {dimension_numbers = #tpu.dot_dimension_numbers<[1], [0], [0], [1], [0, 0, 1, 1], [], []>} : vector<8x64xf32>, vector<64x2xf32>, vector<8x2xf32> -> vector<8x2xf32>
    %c0_83 = arith.constant 0 : index
    %c0_84 = arith.constant 0 : index
    %509 = vector.load %arg5[%c0_83, %c0_84] : memref<1x2xf32, #tpu.memory_space<vmem>>, vector<1x2xf32>
    %cst_85 = arith.constant 2.000000e+00 : f32
    %510 = vector.broadcast %cst_85 : f32 to vector<1x2xf32>
    %511 = arith.mulf %510, %509 : vector<1x2xf32>
    %512 = vector.broadcast %511 : vector<1x2xf32> to vector<8x2xf32>
    %513 = arith.addf %508, %512 : vector<8x2xf32>
    %514 = math.tanh %513 : vector<8x2xf32>
    %c0_86 = arith.constant 0 : index
    %c0_87 = arith.constant 0 : index
    %515 = vector.load %arg6[%c0_86, %c0_87] : memref<8x2xf32, #tpu.memory_space<vmem>>, vector<8x2xf32>
    tpu.vector_store %arg6[%c0_86, %c0_87], %514 {strides = array<i32>} : memref<8x2xf32, #tpu.memory_space<vmem>>, vector<8x2xf32>,
    return
  }
}

</mosaic_0001>

<bundles_post_ra>
// kernel: model_forward.1
= control target key start
LH: loop header
LB: loop body
LE: loop exit
PB: predicated region body
PF: predicated region fallthrough
CT: control target
= control target key end

     0   :  { %v1741_v3 = vmov 0.0   ;;  %vm45_vm0 = vcmask 261120   ;;  %v35_v27 = vlaneseq  ;;  %s1743_s24 = smov 32   ;;  %vm145_vm1 = vcmask 523264   ;;  %s2323_s3 = inlined_call_operand.vmem [shape: f32[64,256], index: 3, kind: input, shape index: {}]   ;;  %s2324_s1 = inlined_call_operand.vmem [shape: f32[32,256], index: 1, kind: input, shape index: {}]   ;;  %s2325_s0 = inlined_call_operand.vmem [shape: f32[16,32], index: 0, kind: input, shape index: {}]   ;;  %s2326_s2 = inlined_call_operand.vmem [shape: f32[1,256], index: 2, kind: input, shape index: {}]   ;;  %s2327_s4 = inlined_call_operand.vmem [shape: f32[64,2], index: 4, kind: input, shape index: {}]   ;;  %s2328_s5 = inlined_call_operand.vmem [shape: f32[1,2], index: 5, kind: input, shape index: {}]   ;;  %s2329_s6 = inlined_call_operand.vmem [shape: f32[8,2], index: 6, kind: output, shape index: {}]  }
   0x1   :  { %v1783_v0 = vld [vmem:[%s2323_s3 + $0x78] sm:$0xff]  ;;  %v1788_v1 = vld [vmem:[%s2323_s3 + $0x70] sm:$0xff]  ;;  %116 = vmatprep.mubr.f32.mxu0 %v1741_v3  ;;  %213 = vmatprep.mubr.f32.mxu1 %v1741_v3  ;;  %v1799_v4 = vld [vmem:[%s2323_s3 + $0x68] sm:$0xff]  ;;  %vm273_vm2 = vcmask 1042176   ;;  %vm1427_vm3 = vcmask 1040384   ;;  %vm1429_vm4 = vcmask 1041408  }
   0x2   :  { %v32_v2 = vld [vmem:[%s2324_s1 + $0x38] sm:$0xff]  ;;  %165 = vmatprep.subr.mxu1 %v1783_v0  ;;  %v31_v5 = vld [vmem:[%s2324_s1 + $0x30] sm:$0xff]  ;;  %v1807_v6 = vld [vmem:[%s2323_s3 + $0x60] sm:$0xff]  ;;  %v1948_v28 = vshrl.u32 %v35_v27, 7  ;;  %vm1431_vm5 = vcmask 1042432   ;;  %vm1433_vm6 = vcmask 1043456  }
   0x3   :  { %76 = vmatprep.subr.mxu0 %v32_v2  ;;  %166 = vmatpush1.msra.mxu1 %v1788_v1  ;;  %v30_v7 = vld [vmem:[%s2324_s1 + $0x28] sm:$0xff]  ;;  %v1816_v8 = vld [vmem:[%s2323_s3 + $0x58] sm:$0xff]  ;;  %v29_v9 = vld [vmem:[%s2324_s1 + $0x20] sm:$0xff]  ;;  %vm1435_vm7 = vcmask 1044480   ;;  %vm1437_vm8 = vcmask 1045504   ;;  %vm1744_vm9 = vmmov 0  }
   0x4   :  { %77 = vmatpush1.msra.mxu0 %v31_v5  ;;  %167 = vmatprep.subr.mxu1 %v1799_v4  ;;  %v1825_v10 = vld [vmem:[%s2323_s3 + $0x50] sm:$0xff]  ;;  %v28_v11 = vld [vmem:[%s2324_s1 + $0x18] sm:$0xff]  ;;  %v1834_v12 = vld [vmem:[%s2323_s3 + $0x48] sm:$0xff]  ;;  %v41_v29 = vsub.s32 1, %v1948_v28  ;;  %v37_v31 = vsub.s32 0, %v1948_v28  ;;  %vm1439_vm10 = vcmask 1046528  }
   0x5   :  { %78 = vmatprep.subr.mxu0 %v30_v7  ;;  %168 = vmatpush1.msra.mxu1 %v1807_v6  ;;  %v27_v13 = vld [vmem:[%s2324_s1 + $0x10] sm:$0xff]  ;;  %v26_v14 = vld [vmem:[%s2324_s1 + $0x8] sm:$0xff]  ;;  %v1846_v15 = vld [vmem:[%s2323_s3 + $0x40] sm:$0xff]  ;;  %vm1547_vm11 = vcmask 15360  }
   0x6   :  { %79 = vmatpush1.msra.mxu0 %v29_v9  ;;  %169 = vmatprep.subr.mxu1 %v1816_v8  ;;  %v25_v16 = vld [vmem:[%s2324_s1] sm:$0xff]  ;;  %v1855_v17 = vld [vmem:[%s2323_s3 + $0x38] sm:$0xff]  ;;  %v1864_v19 = vld [vmem:[%s2323_s3 + $0x30] sm:$0xff] }
   0x7   :  { %80 = vmatprep.subr.mxu0 %v28_v11  ;;  %170 = vmatpush1.msra.mxu1 %v1825_v10  ;;  %v23_v18 = vld [vmem:[%s2325_s0] sm:$0xff]  ;;  %v1870_v20 = vld [vmem:[%s2323_s3 + $0x28] sm:$0xff]  ;;  %v1883_v22 = vld [vmem:[%s2323_s3 + $0x18] sm:$0xff] }
   0x8   :  { %81 = vmatpush1.msra.mxu0 %v27_v13  ;;  %171 = vmatprep.subr.mxu1 %v1834_v12  ;;  %v1877_v21 = vld [vmem:[%s2323_s3 + $0x20] sm:$0xff]  ;;  %v24_v23 = vld [vmem:[%s2325_s0 + $0x8] sm:$0xff]  ;;  %v1893_v24 = vld [vmem:[%s2323_s3 + $0x10] sm:$0xff] }
   0x9   :  { %82 = vmatprep.subr.mxu0 %v26_v14  ;;  %172 = vmatpush1.msra.mxu1 %v1846_v15  ;;  %v1900_v25 = vld [vmem:[%s2323_s3 + $0x8] sm:$0xff]  ;;  %v1908_v26 = vld [vmem:[%s2323_s3] sm:$0xff] }
   0xa   :  { %83 = vmatpush1.msra.mxu0 %v25_v16  ;;  %173 = vmatprep.subr.mxu1 %v1855_v17  ;;  %v33_v30 = vld [vmem:[%s2326_s2] sm:$0x3]  ;;  %s1742_s2 = smov 64  }
   0xb   :  { %1553 = vmatmul.mubr.msk.f32.vlgmr.msra.gmra.mxu0 %vm45_vm0, %v23_v18  ;;  %174 = vmatpush1.msra.mxu1 %v1864_v19  ;;  %v42_v32 = vrot.slane %v33_v30, %v41_v29  ;;  %v38_v35 = vrot.slane %v33_v30, %v37_v31 }
   0xc   :  { %122 = vmatprep.mubr.f32.mxu0 %v1741_v3  ;;  %175 = vmatprep.subr.mxu1 %v1870_v20 }
   0xd   :  { %318 = vmatprep.subr.mxu0 %v1783_v0  ;;  %176 = vmatpush1.msra.mxu1 %v1877_v21 }
   0xe   :  { %319 = vmatpush1.msra.mxu0 %v1788_v1  ;;  %177 = vmatprep.subr.mxu1 %v1883_v22 }
   0xf   :  { %1554 = vmatmul.mubr.msk.f32.gmra.mxu0 %vm45_vm0, %v24_v23  ;;  %178 = vmatpush1.msra.mxu1 %v1893_v24 }
  0x10   :  { %320 = vmatprep.subr.mxu0 %v1799_v4  ;;  %179 = vmatprep.subr.mxu1 %v1900_v25 }
  0x11   :  { %321 = vmatpush1.msra.mxu0 %v1807_v6  ;;  %180 = vmatpush1.msra.mxu1 %v1908_v26 }
  0x12   :  { %322 = vmatprep.subr.mxu0 %v1816_v8  ;;  %214 = vmatmul.mubr.f32.vlgmr.msra.gmra.mxu1 %v1741_v3 }
  0x13   :  { %323 = vmatpush1.msra.mxu0 %v1825_v10  ;;  %366 = vmatprep.mubr.f32.mxu0 %v1741_v3 }
  0x14   :  { %324 = vmatprep.subr.mxu0 %v1834_v12  ;;  %483 = vmatprep.subr.mxu1 %v1783_v0 }
  0x15   :  { %325 = vmatpush1.msra.mxu0 %v1846_v15  ;;  %484 = vmatpush1.msra.mxu1 %v1788_v1 }
  0x16   :  { %326 = vmatprep.subr.mxu0 %v1855_v17  ;;  %485 = vmatprep.subr.mxu1 %v1799_v4 }
  0x17   :  { %327 = vmatpush1.msra.mxu0 %v1864_v19  ;;  %486 = vmatpush1.msra.mxu1 %v1807_v6 }
  0x18   :  { %328 = vmatprep.subr.mxu0 %v1870_v20  ;;  %487 = vmatprep.subr.mxu1 %v1816_v8 }
  0x19   :  { %329 = vmatpush1.msra.mxu0 %v1877_v21  ;;  %488 = vmatpush1.msra.mxu1 %v1825_v10 }
  0x1a   :  { %330 = vmatprep.subr.mxu0 %v1883_v22  ;;  %489 = vmatprep.subr.mxu1 %v1834_v12 }
  0x1b   :  { %331 = vmatpush1.msra.mxu0 %v1893_v24  ;;  %490 = vmatpush1.msra.mxu1 %v1846_v15 }
  0x1c   :  { %332 = vmatprep.subr.mxu0 %v1900_v25  ;;  %491 = vmatprep.subr.mxu1 %v1855_v17 }
  0x1d   :  { %333 = vmatpush1.msra.mxu0 %v1908_v26  ;;  %492 = vmatpush1.msra.mxu1 %v1864_v19 }
  0x1e   :  { %531 = vmatprep.mubr.f32.mxu1 %v1741_v3  ;;  %493 = vmatprep.subr.mxu1 %v1870_v20 }
  0x1f   :  { %648 = vmatprep.subr.mxu0 %v1783_v0  ;;  %494 = vmatpush1.msra.mxu1 %v1877_v21 }
  0x20   :  { %495 = vmatprep.subr.mxu1 %v1883_v22 }
  0x21   :  { %496 = vmatpush1.msra.mxu1 %v1893_v24 }
  0x22   :  { %497 = vmatprep.subr.mxu1 %v1900_v25 }
  0x23   :  { %498 = vmatpush1.msra.mxu1 %v1908_v26 }
  0x24   :  { %808 = vmatprep.subr.mxu1 %v1783_v0 }
  0xcb   :  { %v118_v33 = vpop.f32.mrf.mxu0 }
  0xcc   :  { %v1963_v44 = vadd.f32 %v118_v33, %v38_v35 }
  0xcd   :  { %v120_v34 = vpop.f32.mrf.mxu0 }
  0xce   :  { %v1957_v36 = vadd.f32 %v120_v34, %v42_v32 }
  0xcf   :  { %v124_v37 = vpop.f32.mrf.mxu0 }
  0xd0   :  { %v1959_v38 = vadd.f32 %v124_v37, %v38_v35 }
  0xd1   :  { %v126_v39 = vpop.f32.mrf.mxu0 }
  0xd2   :  { %v215_v40 = vpop.f32.mrf.mxu1  ;;  %v1961_v42 = vadd.f32 %v126_v39, %v42_v32 }
  0xd3   :  { %v220_v46 = vadd.f32 %v215_v40, %v1963_v44 }
  0xd4   :  { %v217_v41 = vpop.f32.mrf.mxu1 }
  0xd5   :  { %v222_v43 = vrot.slane %v217_v41, 2  ;;  %v1555_v50 = vmul.f32 -1.442695, %v220_v46 }
  0xd7   :  { %v224_v45 = vadd.f32 %v222_v43, %v1961_v42 }
  0xd9   :  { %1611 = vtanh.f32 %v224_v45  ;;  %v1556_v49 = vmul.f32 -1.442695, %v224_v45 }
  0xda   :  { %1613 = vtanh.f32 %v220_v46 }
  0xdb   :  { %1615 = vpow2.f32 %v1556_v49 }
  0xdc   :  { %1617 = vpow2.f32 %v1555_v50 }
  0xe6   :  { %v1612_v47 = vpop.eup %1611 }
  0xe7   :  { %258 = vrot.lane.b32.xlu0 %v1612_v47, %s1742_s2  ;;  %v1614_v48 = vpop.eup %1613 }
  0xe8   :  { %v1616_v51 = vpop.eup %1615 }
  0xe9   :  { %v252_v52 = vadd.f32 1.0, %v1616_v51  ;;  %v1618_v53 = vpop.eup %1617 }
  0xea   :  { %v228_v54 = vadd.f32 1.0, %v1618_v53 }
  0xeb   :  { %234 = vrot.lane.b32.xlu0 %v1614_v48, %s1742_s2  ;;  %1619 = vrcp.f32 %v252_v52 }
  0xec   :  { %1621 = vrcp.f32 %v228_v54 }
  0xf8   :  { %v1620_v55 = vpop.eup %1619 }
  0xf9   :  { %v1622_v58 = vpop.eup %1621  ;;  %v256_v61 = vmul.f32 0.0, %v1620_v55 }
  0xfa   :  { %v232_v2 = vmul.f32 0.0, %v1622_v58 }
 0x159   :  { %v259_v56 = vpop.permute.xlu0 %258 }
 0x15a   :  { %v261_v57 = vmul.f32 %v1620_v55, %v259_v56 }
 0x15c   :  { %263 = vrot.lane.b32.xlu1 %v261_v57, %s1743_s24 }
 0x15d   :  { %v235_v59 = vpop.permute.xlu0 %234 }
 0x15e   :  { %v237_v60 = vmul.f32 %v1622_v58, %v235_v59 }
 0x160   :  { %239 = vrot.lane.b32.xlu1 %v237_v60, %s1743_s24 }
 0x1ce   :  { %v264_v62 = vpop.permute.xlu1 %263 }
 0x1cf   :  { %v1971_v63 = vadd.f32 %v264_v62, %v256_v61 }
 0x1d1   :  { %1623 = vtanh.f32 %v1971_v63 }
 0x1d2   :  { %v240_v5 = vpop.permute.xlu1 %239 }
 0x1d3   :  { %v1974_v7 = vadd.f32 %v240_v5, %v232_v2 }
 0x1d5   :  { %1625 = vtanh.f32 %v1974_v7  ;;  %v389_v56 = vrot.slane %v1974_v7, 6 }
 0x1de   :  { %v1624_v9 = vpop.eup %1623 }
 0x1df   :  { %269 = vrot.lane.b32.xlu0 %v1624_v9, %s1742_s2 }
 0x1e2   :  { %v1626_v11 = vpop.eup %1625 }
 0x1e3   :  { %245 = vrot.lane.b32.xlu1 %v1626_v11, %s1742_s2 }
 0x251   :  { %v270_v13 = vpop.permute.xlu0 %269 }
 0x252   :  { %v1979_v14 = vmul.f32 %v1620_v55, %v270_v13 }
 0x254   :  { %v282_v16 = vrot.slane %v1979_v14, 6 }
 0x255   :  { %v246_v18 = vpop.permute.xlu1 %245 }
 0x256   :  { %v1982_v23 = vmul.f32 %v1622_v58, %v246_v18  ;;  %295 = vrot.lane.b32.xlu1 %v282_v16, %s1742_s2  ;;  %v416_v58 = vrot.slane %v1971_v63, 2 }
 0x258   :  { %292 = vrot.lane.b32.xlu0 %v1982_v23, %s1743_s24  ;;  %v274_v63 = vsel %vm273_vm2, %v1982_v23, 0.0 }
 0x259   :  { %v275_v7 = vrot.slane %v274_v63, 4 }
 0x25b   :  { %v276_v11 = vadd.f32 %v275_v7, %v274_v63 }
 0x2c8   :  { %v296_v27 = vpop.permute.xlu1 %295 }
 0x2ca   :  { %v293_v29 = vpop.permute.xlu0 %292 }
 0x2cb   :  { %v298_v30 = vsel %vm45_vm0, %v293_v29, %v296_v27 }
 0x2cc   :  { %1557 = vmatmul.mubr.msk.f32.vlgmr.msra.gmra.mxu0 %vm145_vm1, %v298_v30  ;;  %v277_v30 = vrot.slane %v276_v11, 2 }
 0x2cd   :  { %649 = vmatpush1.msra.mxu0 %v1788_v1  ;;  %696 = vmatprep.mubr.f32.mxu0 %v1741_v3 }
 0x2ce   :  { %650 = vmatprep.subr.mxu0 %v1799_v4 }
 0x2cf   :  { %651 = vmatpush1.msra.mxu0 %v1807_v6 }
 0x2d0   :  { %652 = vmatprep.subr.mxu0 %v1816_v8 }
 0x2d1   :  { %653 = vmatpush1.msra.mxu0 %v1825_v10 }
 0x2d2   :  { %654 = vmatprep.subr.mxu0 %v1834_v12 }
 0x2d3   :  { %655 = vmatpush1.msra.mxu0 %v1846_v15 }
 0x2d4   :  { %656 = vmatprep.subr.mxu0 %v1855_v17 }
 0x2d5   :  { %657 = vmatpush1.msra.mxu0 %v1864_v19 }
 0x2d6   :  { %658 = vmatprep.subr.mxu0 %v1870_v20 }
 0x2d7   :  { %659 = vmatpush1.msra.mxu0 %v1877_v21 }
 0x2d8   :  { %660 = vmatprep.subr.mxu0 %v1883_v22 }
 0x2d9   :  { %661 = vmatpush1.msra.mxu0 %v1893_v24 }
 0x2da   :  { %662 = vmatprep.subr.mxu0 %v1900_v25 }
 0x2db   :  { %663 = vmatpush1.msra.mxu0 %v1908_v26 }
 0x2dc   :  { %966 = vmatprep.subr.mxu0 %v1783_v0 }
 0x38c   :  { %v368_v32 = vpop.f32.mrf.mxu0 }
 0x38d   :  { %v374_v33 = vrot.slane %v368_v32, 6 }
 0x38e   :  { %v370_v34 = vpop.f32.mrf.mxu0 }
 0x38f   :  { %v376_v35 = vadd.f32 %v374_v33, %v1963_v44  ;;  %v378_v37 = vrot.slane %v370_v34, 4 }
 0x391   :  { %1627 = vtanh.f32 %v376_v35  ;;  %v380_v39 = vadd.f32 %v378_v37, %v1961_v42  ;;  %v1558_v43 = vmul.f32 -1.442695, %v376_v35  ;;  %v278_v37 = vadd.f32 %v277_v30, %v276_v11 }
 0x393   :  { %1629 = vtanh.f32 %v380_v39  ;;  %v1559_v45 = vmul.f32 -1.442695, %v380_v39 }
 0x394   :  { %1631 = vpow2.f32 %v1558_v43 }
 0x395   :  { %1633 = vpow2.f32 %v1559_v45 }
 0x39e   :  { %v1628_v40 = vpop.eup %1627 }
 0x39f   :  { %393 = vrot.lane.b32.xlu1 %v1628_v40, %s1742_s2  ;;  %v279_v40 = vrot.slane %v278_v37, 1 }
 0x3a0   :  { %v1630_v41 = vpop.eup %1629 }
 0x3a1   :  { %420 = vrot.lane.b32.xlu0 %v1630_v41, %s1742_s2  ;;  %v1632_v46 = vpop.eup %1631  ;;  %v280_v45 = vadd.f32 %v279_v40, %v278_v37 }
 0x3a2   :  { %v1634_v47 = vpop.eup %1633  ;;  %v384_v48 = vadd.f32 1.0, %v1632_v46 }
 0x3a3   :  { %v411_v49 = vadd.f32 1.0, %v1634_v47 }
 0x3a4   :  { %1635 = vrcp.f32 %v384_v48 }
 0x3a5   :  { %1637 = vrcp.f32 %v411_v49 }
 0x3b1   :  { %v1636_v50 = vpop.eup %1635 }
 0x3b2   :  { %v1638_v53 = vpop.eup %1637  ;;  %v391_v57 = vmul.f32 %v1636_v50, %v389_v56 }
 0x3b3   :  { %v418_v61 = vmul.f32 %v1638_v53, %v416_v58 }
 0x411   :  { %v394_v51 = vpop.permute.xlu1 %393 }
 0x412   :  { %v396_v52 = vmul.f32 %v1636_v50, %v394_v51 }
 0x413   :  { %v421_v54 = vpop.permute.xlu0 %420 }
 0x414   :  { %398 = vrot.lane.b32.xlu1 %v396_v52, %s1743_s24  ;;  %v423_v55 = vmul.f32 %v1638_v53, %v421_v54 }
 0x416   :  { %425 = vrot.lane.b32.xlu0 %v423_v55, %s1743_s24 }
 0x486   :  { %v399_v59 = vpop.permute.xlu1 %398 }
 0x487   :  { %v2016_v60 = vadd.f32 %v399_v59, %v391_v57 }
 0x488   :  { %v426_v62 = vpop.permute.xlu0 %425 }
 0x489   :  { %1639 = vtanh.f32 %v2016_v60  ;;  %v2019_v2 = vadd.f32 %v426_v62, %v418_v61 }
 0x48b   :  { %1641 = vtanh.f32 %v2019_v2 }
 0x496   :  { %v1640_v5 = vpop.eup %1639 }
 0x497   :  { %404 = vrot.lane.b32.xlu1 %v1640_v5, %s1742_s2 }
 0x498   :  { %v1642_v9 = vpop.eup %1641 }
 0x499   :  { %431 = vrot.lane.b32.xlu0 %v1642_v9, %s1742_s2 }
 0x509   :  { %v405_v13 = vpop.permute.xlu1 %404 }
 0x50a   :  { %v407_v18 = vmul.f32 %v1636_v50, %v405_v13 }
 0x50b   :  { %v432_v29 = vpop.permute.xlu0 %431 }
 0x50c   :  { %v436_v27 = vrot.slane %v407_v18, 2  ;;  %455 = vrot.lane.b32.xlu0 %v407_v18, %s1743_s24  ;;  %v2027_v32 = vmul.f32 %v1638_v53, %v432_v29 }
 0x50e   :  { %v438_v33 = vsel %vm273_vm2, %v436_v27, 0.0  ;;  %v458_v35 = vrot.slane %v2027_v32, 2 }
 0x50f   :  { %v439_v34 = vrot.slane %v438_v33, 4 }
 0x510   :  { %459 = vrot.lane.b32.xlu1 %v458_v35, %s1742_s2  ;;  %v581_v35 = vrot.slane %v2019_v2, 2 }
 0x511   :  { %v440_v39 = vadd.f32 %v439_v34, %v438_v33  ;;  %v554_v33 = vrot.slane %v2016_v60, 6 }
 0x513   :  { %v441_v23 = vrot.slane %v440_v39, 2 }
 0x515   :  { %v442_v41 = vadd.f32 %v441_v23, %v440_v39 }
 0x517   :  { %v443_v43 = vrot.slane %v442_v41, 1 }
 0x519   :  { %v444_v46 = vadd.f32 %v443_v43, %v442_v41 }
 0x51b   :  { %v2033_v47 = vsel %vm1427_vm3, %v280_v45, %v444_v46 }
 0x57e   :  { %v456_v48 = vpop.permute.xlu0 %455 }
 0x582   :  { %v460_v49 = vpop.permute.xlu1 %459 }
 0x583   :  { %v462_v50 = vsel %vm45_vm0, %v456_v48, %v460_v49 }
 0x584   :  { %v464_v51 = vrot.slane %v462_v50, 2 }
 0x586   :  { %1560 = vmatmul.mubr.msk.f32.vlgmr.msra.gmra.mxu1 %vm145_vm1, %v464_v51 }
 0x587   :  { %809 = vmatpush1.msra.mxu1 %v1788_v1  ;;  %856 = vmatprep.mubr.f32.mxu1 %v1741_v3 }
 0x588   :  { %810 = vmatprep.subr.mxu1 %v1799_v4 }
 0x589   :  { %811 = vmatpush1.msra.mxu1 %v1807_v6 }
 0x58a   :  { %812 = vmatprep.subr.mxu1 %v1816_v8 }
 0x58b   :  { %813 = vmatpush1.msra.mxu1 %v1825_v10 }
 0x58c   :  { %814 = vmatprep.subr.mxu1 %v1834_v12 }
 0x58d   :  { %815 = vmatpush1.msra.mxu1 %v1846_v15 }
 0x58e   :  { %816 = vmatprep.subr.mxu1 %v1855_v17 }
 0x58f   :  { %817 = vmatpush1.msra.mxu1 %v1864_v19 }
 0x590   :  { %818 = vmatprep.subr.mxu1 %v1870_v20 }
 0x591   :  { %819 = vmatpush1.msra.mxu1 %v1877_v21 }
 0x592   :  { %820 = vmatprep.subr.mxu1 %v1883_v22 }
 0x593   :  { %821 = vmatpush1.msra.mxu1 %v1893_v24 }
 0x594   :  { %822 = vmatprep.subr.mxu1 %v1900_v25 }
 0x595   :  { %823 = vmatpush1.msra.mxu1 %v1908_v26 }
 0x596   :  { %1131 = vmatprep.subr.mxu1 %v1783_v0 }
 0x646   :  { %v533_v52 = vpop.f32.mrf.mxu1 }
 0x647   :  { %v539_v53 = vrot.slane %v533_v52, 4 }
 0x648   :  { %v535_v54 = vpop.f32.mrf.mxu1 }
 0x649   :  { %v541_v55 = vadd.f32 %v539_v53, %v1963_v44  ;;  %v543_v56 = vrot.slane %v535_v54, 6 }
 0x64b   :  { %1643 = vtanh.f32 %v541_v55  ;;  %v545_v57 = vadd.f32 %v543_v56, %v1961_v42  ;;  %v1561_v61 = vmul.f32 -1.442695, %v541_v55 }
 0x64d   :  { %1645 = vtanh.f32 %v545_v57  ;;  %v1562_v62 = vmul.f32 -1.442695, %v545_v57 }
 0x64e   :  { %1647 = vpow2.f32 %v1561_v61 }
 0x64f   :  { %1649 = vpow2.f32 %v1562_v62 }
 0x658   :  { %v1644_v58 = vpop.eup %1643 }
 0x659   :  { %558 = vrot.lane.b32.xlu1 %v1644_v58, %s1742_s2 }
 0x65a   :  { %v1646_v59 = vpop.eup %1645 }
 0x65b   :  { %585 = vrot.lane.b32.xlu0 %v1646_v59, %s1742_s2  ;;  %v1648_v5 = vpop.eup %1647 }
 0x65c   :  { %v1650_v9 = vpop.eup %1649  ;;  %v549_v63 = vadd.f32 1.0, %v1648_v5 }
 0x65d   :  { %v576_v7 = vadd.f32 1.0, %v1650_v9 }
 0x65e   :  { %1651 = vrcp.f32 %v549_v63 }
 0x65f   :  { %1653 = vrcp.f32 %v576_v7 }
 0x66b   :  { %v1652_v11 = vpop.eup %1651 }
 0x66c   :  { %v1654_v27 = vpop.eup %1653  ;;  %v556_v34 = vmul.f32 %v1652_v11, %v554_v33 }
 0x66d   :  { %v583_v23 = vmul.f32 %v1654_v27, %v581_v35 }
 0x6cb   :  { %v559_v13 = vpop.permute.xlu1 %558 }
 0x6cc   :  { %v561_v18 = vmul.f32 %v1652_v11, %v559_v13 }
 0x6cd   :  { %v586_v29 = vpop.permute.xlu0 %585 }
 0x6ce   :  { %563 = vrot.lane.b32.xlu1 %v561_v18, %s1743_s24  ;;  %v588_v30 = vmul.f32 %v1654_v27, %v586_v29 }
 0x6d0   :  { %590 = vrot.lane.b32.xlu0 %v588_v30, %s1743_s24 }
 0x740   :  { %v564_v37 = vpop.permute.xlu1 %563 }
 0x741   :  { %v2062_v39 = vadd.f32 %v564_v37, %v556_v34 }
 0x742   :  { %v591_v40 = vpop.permute.xlu0 %590 }
 0x743   :  { %1655 = vtanh.f32 %v2062_v39  ;;  %v2065_v41 = vadd.f32 %v591_v40, %v583_v23 }
 0x745   :  { %1657 = vtanh.f32 %v2065_v41 }
 0x750   :  { %v1656_v43 = vpop.eup %1655 }
 0x751   :  { %569 = vrot.lane.b32.xlu1 %v1656_v43, %s1742_s2  ;;  %v716_v43 = vrot.slane %v2062_v39, 6 }
 0x752   :  { %v1658_v45 = vpop.eup %1657 }
 0x753   :  { %596 = vrot.lane.b32.xlu0 %v1658_v45, %s1742_s2  ;;  %v743_v45 = vrot.slane %v2065_v41, 2 }
 0x7c3   :  { %v570_v60 = vpop.permute.xlu1 %569 }
 0x7c4   :  { %v572_v46 = vmul.f32 %v1652_v11, %v570_v60 }
 0x7c5   :  { %v597_v48 = vpop.permute.xlu0 %596 }
 0x7c6   :  { %v601_v2 = vrot.slane %v572_v46, 4  ;;  %620 = vrot.lane.b32.xlu0 %v572_v46, %s1743_s24  ;;  %v2071_v49 = vmul.f32 %v1654_v27, %v597_v48 }
 0x7c8   :  { %v603_v50 = vsel %vm273_vm2, %v601_v2, 0.0  ;;  %v623_v52 = vrot.slane %v2071_v49, 6 }
 0x7c9   :  { %v604_v51 = vrot.slane %v603_v50, 4 }
 0x7ca   :  { %624 = vrot.lane.b32.xlu1 %v623_v52, %s1742_s2 }
 0x7cb   :  { %v605_v53 = vadd.f32 %v604_v51, %v603_v50 }
 0x7cd   :  { %v606_v54 = vrot.slane %v605_v53, 2 }
 0x7cf   :  { %v607_v55 = vadd.f32 %v606_v54, %v605_v53 }
 0x7d1   :  { %v608_v56 = vrot.slane %v607_v55, 1 }
 0x7d3   :  { %v609_v57 = vadd.f32 %v608_v56, %v607_v55 }
 0x7d5   :  { %v2078_v58 = vsel %vm1429_vm4, %v2033_v47, %v609_v57 }
 0x838   :  { %v621_v59 = vpop.permute.xlu0 %620 }
 0x83c   :  { %v625_v61 = vpop.permute.xlu1 %624 }
 0x83d   :  { %v627_v62 = vsel %vm45_vm0, %v621_v59, %v625_v61 }
 0x83e   :  { %v629_v5 = vrot.slane %v627_v62, 4 }
 0x840   :  { %1563 = vmatmul.mubr.msk.f32.vlgmr.msra.gmra.mxu0 %vm145_vm1, %v629_v5 }
 0x841   :  { %967 = vmatpush1.msra.mxu0 %v1788_v1  ;;  %1014 = vmatprep.mubr.f32.mxu0 %v1741_v3 }
 0x842   :  { %968 = vmatprep.subr.mxu0 %v1799_v4 }
 0x843   :  { %969 = vmatpush1.msra.mxu0 %v1807_v6 }
 0x844   :  { %970 = vmatprep.subr.mxu0 %v1816_v8 }
 0x845   :  { %971 = vmatpush1.msra.mxu0 %v1825_v10 }
 0x846   :  { %972 = vmatprep.subr.mxu0 %v1834_v12 }
 0x847   :  { %973 = vmatpush1.msra.mxu0 %v1846_v15 }
 0x848   :  { %974 = vmatprep.subr.mxu0 %v1855_v17 }
 0x849   :  { %975 = vmatpush1.msra.mxu0 %v1864_v19 }
 0x84a   :  { %976 = vmatprep.subr.mxu0 %v1870_v20 }
 0x84b   :  { %977 = vmatpush1.msra.mxu0 %v1877_v21 }
 0x84c   :  { %978 = vmatprep.subr.mxu0 %v1883_v22 }
 0x84d   :  { %979 = vmatpush1.msra.mxu0 %v1893_v24 }
 0x84e   :  { %980 = vmatprep.subr.mxu0 %v1900_v25 }
 0x84f   :  { %981 = vmatpush1.msra.mxu0 %v1908_v26 }
 0x850   :  { %1296 = vmatprep.subr.mxu0 %v1783_v0 }
 0x900   :  { %v698_v47 = vpop.f32.mrf.mxu0 }
 0x901   :  { %v704_v9 = vrot.slane %v698_v47, 2 }
 0x902   :  { %v700_v63 = vpop.f32.mrf.mxu0 }
 0x903   :  { %v706_v7 = vadd.f32 %v704_v9, %v1963_v44  ;;  %v707_v11 = vadd.f32 %v700_v63, %v1961_v42 }
 0x905   :  { %1659 = vtanh.f32 %v706_v7  ;;  %v1564_v27 = vmul.f32 -1.442695, %v706_v7  ;;  %v1565_v29 = vmul.f32 -1.442695, %v707_v11 }
 0x906   :  { %1661 = vtanh.f32 %v707_v11 }
 0x907   :  { %1663 = vpow2.f32 %v1564_v27 }
 0x908   :  { %1665 = vpow2.f32 %v1565_v29 }
 0x912   :  { %v1660_v13 = vpop.eup %1659 }
 0x913   :  { %v1662_v18 = vpop.eup %1661  ;;  %720 = vrot.lane.b32.xlu1 %v1660_v13, %s1742_s2 }
 0x914   :  { %747 = vrot.lane.b32.xlu0 %v1662_v18, %s1742_s2  ;;  %v1664_v0 = vpop.eup %1663 }
 0x915   :  { %v1666_v30 = vpop.eup %1665  ;;  %v711_v33 = vadd.f32 1.0, %v1664_v0 }
 0x916   :  { %v738_v34 = vadd.f32 1.0, %v1666_v30 }
 0x917   :  { %1667 = vrcp.f32 %v711_v33 }
 0x918   :  { %1669 = vrcp.f32 %v738_v34 }
 0x924   :  { %v1668_v44 = vpop.eup %1667 }
 0x925   :  { %v1670_v35 = vpop.eup %1669  ;;  %v718_v60 = vmul.f32 %v1668_v44, %v716_v43 }
 0x926   :  { %v745_v2 = vmul.f32 %v1670_v35, %v743_v45 }
 0x985   :  { %v721_v42 = vpop.permute.xlu1 %720 }
 0x986   :  { %v723_v37 = vmul.f32 %v1668_v44, %v721_v42  ;;  %v748_v23 = vpop.permute.xlu0 %747 }
 0x987   :  { %v750_v40 = vmul.f32 %v1670_v35, %v748_v23 }
 0x988   :  { %725 = vrot.lane.b32.xlu1 %v723_v37, %s1743_s24 }
 0x989   :  { %752 = vrot.lane.b32.xlu0 %v750_v40, %s1743_s24 }
 0x9fa   :  { %v726_v46 = vpop.permute.xlu1 %725 }
 0x9fb   :  { %v2107_v48 = vadd.f32 %v726_v46, %v718_v60  ;;  %v753_v50 = vpop.permute.xlu0 %752 }
 0x9fc   :  { %v2109_v51 = vadd.f32 %v753_v50, %v745_v2 }
 0x9fd   :  { %1671 = vtanh.f32 %v2107_v48 }
 0x9fe   :  { %1673 = vtanh.f32 %v2109_v51 }
 0xa0a   :  { %v1672_v52 = vpop.eup %1671 }
 0xa0b   :  { %v1674_v53 = vpop.eup %1673  ;;  %731 = vrot.lane.b32.xlu1 %v1672_v52, %s1742_s2 }
 0xa0c   :  { %758 = vrot.lane.b32.xlu0 %v1674_v53, %s1742_s2  ;;  %v876_v53 = vrot.slane %v2107_v48, 6 }
 0xa7d   :  { %v732_v39 = vpop.permute.xlu1 %731 }
 0xa7e   :  { %v734_v41 = vmul.f32 %v1668_v44, %v732_v39  ;;  %v759_v54 = vpop.permute.xlu0 %758 }
 0xa7f   :  { %v2115_v55 = vmul.f32 %v1670_v35, %v759_v54  ;;  %v903_v54 = vrot.slane %v2109_v51, 2 }
 0xa80   :  { %v763_v56 = vrot.slane %v734_v41, 6  ;;  %779 = vrot.lane.b32.xlu0 %v734_v41, %s1743_s24 }
 0xa81   :  { %v783_v57 = vrot.slane %v2115_v55, 2 }
 0xa82   :  { %v765_v59 = vsel %vm273_vm2, %v763_v56, 0.0 }
 0xa83   :  { %v766_v61 = vrot.slane %v765_v59, 4  ;;  %784 = vrot.lane.b32.xlu1 %v783_v57, %s1742_s2 }
 0xa85   :  { %v767_v62 = vadd.f32 %v766_v61, %v765_v59 }
 0xa87   :  { %v768_v5 = vrot.slane %v767_v62, 2 }
 0xa89   :  { %v769_v47 = vadd.f32 %v768_v5, %v767_v62 }
 0xa8b   :  { %v770_v9 = vrot.slane %v769_v47, 1 }
 0xa8d   :  { %v771_v63 = vadd.f32 %v770_v9, %v769_v47 }
 0xa8f   :  { %v2123_v7 = vsel %vm1431_vm5, %v2078_v58, %v771_v63 }
 0xaf2   :  { %v780_v11 = vpop.permute.xlu0 %779 }
 0xaf5   :  { %v785_v13 = vpop.permute.xlu1 %784 }
 0xaf6   :  { %v787_v18 = vsel %vm45_vm0, %v780_v11, %v785_v13 }
 0xaf7   :  { %v789_v27 = vrot.slane %v787_v18, 6 }
 0xaf9   :  { %1566 = vmatmul.mubr.msk.f32.vlgmr.msra.gmra.mxu1 %vm145_vm1, %v789_v27 }
 0xafa   :  { %1132 = vmatpush1.msra.mxu1 %v1788_v1  ;;  %1179 = vmatprep.mubr.f32.mxu1 %v1741_v3 }
 0xafb   :  { %1133 = vmatprep.subr.mxu1 %v1799_v4 }
 0xafc   :  { %1134 = vmatpush1.msra.mxu1 %v1807_v6 }
 0xafd   :  { %1135 = vmatprep.subr.mxu1 %v1816_v8 }
 0xafe   :  { %1136 = vmatpush1.msra.mxu1 %v1825_v10 }
 0xaff   :  { %1137 = vmatprep.subr.mxu1 %v1834_v12 }
 0xb00   :  { %1138 = vmatpush1.msra.mxu1 %v1846_v15 }
 0xb01   :  { %1139 = vmatprep.subr.mxu1 %v1855_v17 }
 0xb02   :  { %1140 = vmatpush1.msra.mxu1 %v1864_v19 }
 0xb03   :  { %1141 = vmatprep.subr.mxu1 %v1870_v20 }
 0xb04   :  { %1142 = vmatpush1.msra.mxu1 %v1877_v21 }
 0xb05   :  { %1143 = vmatprep.subr.mxu1 %v1883_v22 }
 0xb06   :  { %1144 = vmatpush1.msra.mxu1 %v1893_v24 }
 0xb07   :  { %1145 = vmatprep.subr.mxu1 %v1900_v25 }
 0xb08   :  { %1146 = vmatpush1.msra.mxu1 %v1908_v26 }
 0xb09   :  { %1588 = vmatprep.subr.mxu1 %v1741_v3 }
 0xbb9   :  { %v858_v58 = vpop.f32.mrf.mxu1 }
 0xbba   :  { %v863_v29 = vadd.f32 %v858_v58, %v1959_v38 }
 0xbbb   :  { %v860_v0 = vpop.f32.mrf.mxu1 }
 0xbbc   :  { %1675 = vtanh.f32 %v863_v29  ;;  %v865_v30 = vrot.slane %v860_v0, 2  ;;  %v1567_v42 = vmul.f32 -1.442695, %v863_v29 }
 0xbbe   :  { %v867_v33 = vadd.f32 %v865_v30, %v1957_v36 }
 0xbc0   :  { %1677 = vtanh.f32 %v867_v33  ;;  %v1568_v35 = vmul.f32 -1.442695, %v867_v33 }
 0xbc1   :  { %1679 = vpow2.f32 %v1567_v42 }
 0xbc2   :  { %1681 = vpow2.f32 %v1568_v35 }
 0xbc9   :  { %v1676_v34 = vpop.eup %1675 }
 0xbca   :  { %880 = vrot.lane.b32.xlu1 %v1676_v34, %s1742_s2 }
 0xbcd   :  { %v1678_v44 = vpop.eup %1677 }
 0xbce   :  { %907 = vrot.lane.b32.xlu0 %v1678_v44, %s1742_s2  ;;  %v1680_v37 = vpop.eup %1679 }
 0xbcf   :  { %v871_v23 = vadd.f32 1.0, %v1680_v37  ;;  %v1682_v40 = vpop.eup %1681 }
 0xbd0   :  { %v898_v43 = vadd.f32 1.0, %v1682_v40 }
 0xbd1   :  { %1683 = vrcp.f32 %v871_v23 }
 0xbd2   :  { %1685 = vrcp.f32 %v898_v43 }
 0xbde   :  { %v1684_v45 = vpop.eup %1683 }
 0xbdf   :  { %v1686_v2 = vpop.eup %1685  ;;  %v878_v39 = vmul.f32 %v1684_v45, %v876_v53 }
 0xbe0   :  { %v905_v57 = vmul.f32 %v1686_v2, %v903_v54 }
 0xc3c   :  { %v881_v60 = vpop.permute.xlu1 %880 }
 0xc3d   :  { %v883_v46 = vmul.f32 %v1684_v45, %v881_v60 }
 0xc3f   :  { %885 = vrot.lane.b32.xlu1 %v883_v46, %s1743_s24 }
 0xc40   :  { %v908_v50 = vpop.permute.xlu0 %907 }
 0xc41   :  { %v910_v52 = vmul.f32 %v1686_v2, %v908_v50 }
 0xc43   :  { %912 = vrot.lane.b32.xlu0 %v910_v52, %s1743_s24 }
 0xcb1   :  { %v886_v41 = vpop.permute.xlu1 %885 }
 0xcb2   :  { %v2152_v56 = vadd.f32 %v886_v41, %v878_v39 }
 0xcb4   :  { %1687 = vtanh.f32 %v2152_v56  ;;  %v1037_v40 = vrot.slane %v2152_v56, 6 }
 0xcb5   :  { %v913_v59 = vpop.permute.xlu0 %912 }
 0xcb6   :  { %v2155_v61 = vadd.f32 %v913_v59, %v905_v57 }
 0xcb8   :  { %1689 = vtanh.f32 %v2155_v61 }
 0xcc1   :  { %v1688_v62 = vpop.eup %1687 }
 0xcc2   :  { %891 = vrot.lane.b32.xlu1 %v1688_v62, %s1742_s2 }
 0xcc5   :  { %v1690_v5 = vpop.eup %1689 }
 0xcc6   :  { %918 = vrot.lane.b32.xlu0 %v1690_v5, %s1742_s2 }
 0xd34   :  { %v892_v48 = vpop.permute.xlu1 %891 }
 0xd35   :  { %v894_v47 = vmul.f32 %v1684_v45, %v892_v48  ;;  %v1064_v45 = vrot.slane %v2155_v61, 2 }
 0xd37   :  { %v922_v51 = vsel %vm273_vm2, %v894_v47, 0.0  ;;  %940 = vrot.lane.b32.xlu0 %v894_v47, %s1743_s24 }
 0xd38   :  { %v923_v9 = vrot.slane %v922_v51, 4  ;;  %v919_v63 = vpop.permute.xlu0 %918 }
 0xd39   :  { %v2162_v11 = vmul.f32 %v1686_v2, %v919_v63 }
 0xd3a   :  { %v924_v13 = vadd.f32 %v923_v9, %v922_v51 }
 0xd3b   :  { %v930_v18 = vrot.slane %v2162_v11, 6 }
 0xd3c   :  { %v925_v27 = vrot.slane %v924_v13, 2 }
 0xd3d   :  { %943 = vrot.lane.b32.xlu1 %v930_v18, %s1742_s2 }
 0xd3e   :  { %v926_v58 = vadd.f32 %v925_v27, %v924_v13 }
 0xd40   :  { %v927_v29 = vrot.slane %v926_v58, 1 }
 0xd42   :  { %v928_v0 = vadd.f32 %v927_v29, %v926_v58 }
 0xd44   :  { %v2170_v30 = vsel %vm1433_vm6, %v2123_v7, %v928_v0 }
 0xda9   :  { %v941_v33 = vpop.permute.xlu0 %940 }
 0xdaf   :  { %v944_v34 = vpop.permute.xlu1 %943 }
 0xdb0   :  { %v946_v44 = vsel %vm45_vm0, %v941_v33, %v944_v34 }
 0xdb1   :  { %1569 = vmatmul.mubr.msk.f32.vlgmr.msra.gmra.mxu0 %vm145_vm1, %v946_v44 }
 0xdb2   :  { %1297 = vmatpush1.msra.mxu0 %v1788_v1  ;;  %1344 = vmatprep.mubr.f32.mxu0 %v1741_v3 }
 0xdb3   :  { %1298 = vmatprep.subr.mxu0 %v1799_v4 }
 0xdb4   :  { %1299 = vmatpush1.msra.mxu0 %v1807_v6 }
 0xdb5   :  { %1300 = vmatprep.subr.mxu0 %v1816_v8 }
 0xdb6   :  { %1301 = vmatpush1.msra.mxu0 %v1825_v10 }
 0xdb7   :  { %1302 = vmatprep.subr.mxu0 %v1834_v12 }
 0xdb8   :  { %1303 = vmatpush1.msra.mxu0 %v1846_v15 }
 0xdb9   :  { %1304 = vmatprep.subr.mxu0 %v1855_v17 }
 0xdba   :  { %1305 = vmatpush1.msra.mxu0 %v1864_v19 }
 0xdbb   :  { %1306 = vmatprep.subr.mxu0 %v1870_v20 }
 0xdbc   :  { %1307 = vmatpush1.msra.mxu0 %v1877_v21 }
 0xdbd   :  { %1308 = vmatprep.subr.mxu0 %v1883_v22 }
 0xdbe   :  { %1309 = vmatpush1.msra.mxu0 %v1893_v24 }
 0xdbf   :  { %1310 = vmatprep.subr.mxu0 %v1900_v25 }
 0xdc0   :  { %1311 = vmatpush1.msra.mxu0 %v1908_v26 }
 0xe71   :  { %v1016_v1 = vpop.f32.mrf.mxu0 }
 0xe72   :  { %v1022_v4 = vrot.slane %v1016_v1, 6 }
 0xe73   :  { %v1018_v6 = vpop.f32.mrf.mxu0 }
 0xe74   :  { %v1024_v8 = vadd.f32 %v1022_v4, %v1959_v38  ;;  %v1026_v10 = vrot.slane %v1018_v6, 4 }
 0xe76   :  { %1691 = vtanh.f32 %v1024_v8  ;;  %v1028_v12 = vadd.f32 %v1026_v10, %v1957_v36  ;;  %v1570_v19 = vmul.f32 -1.442695, %v1024_v8 }
 0xe78   :  { %1693 = vtanh.f32 %v1028_v12  ;;  %v1571_v20 = vmul.f32 -1.442695, %v1028_v12 }
 0xe79   :  { %1695 = vpow2.f32 %v1570_v19 }
 0xe7a   :  { %1697 = vpow2.f32 %v1571_v20 }
 0xe83   :  { %v1692_v15 = vpop.eup %1691 }
 0xe84   :  { %1041 = vrot.lane.b32.xlu1 %v1692_v15, %s1742_s2 }
 0xe85   :  { %v1694_v17 = vpop.eup %1693 }
 0xe86   :  { %1068 = vrot.lane.b32.xlu0 %v1694_v17, %s1742_s2  ;;  %v1696_v21 = vpop.eup %1695 }
 0xe87   :  { %v1698_v22 = vpop.eup %1697  ;;  %v1032_v24 = vadd.f32 1.0, %v1696_v21 }
 0xe88   :  { %v1059_v25 = vadd.f32 1.0, %v1698_v22 }
 0xe89   :  { %1699 = vrcp.f32 %v1032_v24 }
 0xe8a   :  { %1701 = vrcp.f32 %v1059_v25 }
 0xe96   :  { %v1700_v26 = vpop.eup %1699 }
 0xe97   :  { %v1702_v35 = vpop.eup %1701  ;;  %v1039_v43 = vmul.f32 %v1700_v26, %v1037_v40 }
 0xe98   :  { %v1066_v2 = vmul.f32 %v1702_v35, %v1064_v45 }
 0xef6   :  { %v1042_v7 = vpop.permute.xlu1 %1041 }
 0xef7   :  { %v1044_v42 = vmul.f32 %v1700_v26, %v1042_v7 }
 0xef8   :  { %v1069_v37 = vpop.permute.xlu0 %1068 }
 0xef9   :  { %1046 = vrot.lane.b32.xlu1 %v1044_v42, %s1743_s24  ;;  %v1071_v23 = vmul.f32 %v1702_v35, %v1069_v37 }
 0xefb   :  { %1073 = vrot.lane.b32.xlu0 %v1071_v23, %s1743_s24 }
 0xf6b   :  { %v1047_v60 = vpop.permute.xlu1 %1046 }
 0xf6c   :  { %v2198_v46 = vadd.f32 %v1047_v60, %v1039_v43 }
 0xf6d   :  { %v1074_v50 = vpop.permute.xlu0 %1073 }
 0xf6e   :  { %1703 = vtanh.f32 %v2198_v46  ;;  %v2201_v52 = vadd.f32 %v1074_v50, %v1066_v2  ;;  %v1202_v42 = vrot.slane %v2198_v46, 6 }
 0xf70   :  { %1705 = vtanh.f32 %v2201_v52  ;;  %v1229_v37 = vrot.slane %v2201_v52, 2 }
 0xf7b   :  { %v1704_v53 = vpop.eup %1703 }
 0xf7c   :  { %1052 = vrot.lane.b32.xlu1 %v1704_v53, %s1742_s2 }
 0xf7d   :  { %v1706_v39 = vpop.eup %1705 }
 0xf7e   :  { %1079 = vrot.lane.b32.xlu0 %v1706_v39, %s1742_s2 }
 0xfee   :  { %v1053_v41 = vpop.permute.xlu1 %1052 }
 0xfef   :  { %v1055_v54 = vmul.f32 %v1700_v26, %v1053_v41 }
 0xff0   :  { %v1080_v57 = vpop.permute.xlu0 %1079 }
 0xff1   :  { %v1084_v56 = vrot.slane %v1055_v54, 2  ;;  %1103 = vrot.lane.b32.xlu0 %v1055_v54, %s1743_s24  ;;  %v2207_v59 = vmul.f32 %v1702_v35, %v1080_v57 }
 0xff3   :  { %v1086_v61 = vsel %vm273_vm2, %v1084_v56, 0.0  ;;  %v1106_v5 = vrot.slane %v2207_v59, 2 }
 0xff4   :  { %v1087_v62 = vrot.slane %v1086_v61, 4 }
 0xff5   :  { %1107 = vrot.lane.b32.xlu1 %v1106_v5, %s1742_s2 }
 0xff6   :  { %v1088_v48 = vadd.f32 %v1087_v62, %v1086_v61 }
 0xff8   :  { %v1089_v47 = vrot.slane %v1088_v48, 2 }
 0xffa   :  { %v1090_v51 = vadd.f32 %v1089_v47, %v1088_v48 }
 0xffc   :  { %v1091_v9 = vrot.slane %v1090_v51, 1 }
 0xffe   :  { %v1092_v63 = vadd.f32 %v1091_v9, %v1090_v51 }
0x1000   :  { %v2214_v13 = vsel %vm1435_vm7, %v2170_v30, %v1092_v63 }
0x1063   :  { %v1104_v27 = vpop.permute.xlu0 %1103 }
0x1067   :  { %v1108_v58 = vpop.permute.xlu1 %1107 }
0x1068   :  { %v1110_v29 = vsel %vm45_vm0, %v1104_v27, %v1108_v58 }
0x1069   :  { %v1112_v0 = vrot.slane %v1110_v29, 2 }
0x106b   :  { %1572 = vmatmul.mubr.msk.f32.vlgmr.msra.gmra.mxu1 %vm145_vm1, %v1112_v0 }
0x106c   :  { %1604 = vmatprep.mubr.msk.f32.mxu1 %vm1744_vm9, %v1741_v3 }
0x112b   :  { %v1181_v33 = vpop.f32.mrf.mxu1 }
0x112c   :  { %v1187_v34 = vrot.slane %v1181_v33, 4 }
0x112d   :  { %v1183_v44 = vpop.f32.mrf.mxu1 }
0x112e   :  { %v1189_v1 = vadd.f32 %v1187_v34, %v1959_v38  ;;  %v1191_v4 = vrot.slane %v1183_v44, 6 }
0x1130   :  { %1707 = vtanh.f32 %v1189_v1  ;;  %v1193_v6 = vadd.f32 %v1191_v4, %v1957_v36  ;;  %v1573_v10 = vmul.f32 -1.442695, %v1189_v1 }
0x1132   :  { %1709 = vtanh.f32 %v1193_v6  ;;  %v1574_v12 = vmul.f32 -1.442695, %v1193_v6 }
0x1133   :  { %1711 = vpow2.f32 %v1573_v10 }
0x1134   :  { %1713 = vpow2.f32 %v1574_v12 }
0x113d   :  { %v1708_v8 = vpop.eup %1707 }
0x113e   :  { %1206 = vrot.lane.b32.xlu1 %v1708_v8, %s1742_s2 }
0x113f   :  { %v1710_v30 = vpop.eup %1709 }
0x1140   :  { %1233 = vrot.lane.b32.xlu0 %v1710_v30, %s1742_s2  ;;  %v1712_v15 = vpop.eup %1711 }
0x1141   :  { %v1714_v17 = vpop.eup %1713  ;;  %v1197_v19 = vadd.f32 1.0, %v1712_v15 }
0x1142   :  { %v1224_v20 = vadd.f32 1.0, %v1714_v17 }
0x1143   :  { %1715 = vrcp.f32 %v1197_v19 }
0x1144   :  { %1717 = vrcp.f32 %v1224_v20 }
0x1150   :  { %v1716_v21 = vpop.eup %1715 }
0x1151   :  { %v1718_v25 = vpop.eup %1717  ;;  %v1204_v35 = vmul.f32 %v1716_v21, %v1202_v42 }
0x1152   :  { %v1231_v43 = vmul.f32 %v1718_v25, %v1229_v37 }
0x11b0   :  { %v1207_v22 = vpop.permute.xlu1 %1206 }
0x11b1   :  { %v1209_v24 = vmul.f32 %v1716_v21, %v1207_v22 }
0x11b2   :  { %v1234_v26 = vpop.permute.xlu0 %1233 }
0x11b3   :  { %1211 = vrot.lane.b32.xlu1 %v1209_v24, %s1743_s24  ;;  %v1236_v7 = vmul.f32 %v1718_v25, %v1234_v26 }
0x11b5   :  { %1238 = vrot.lane.b32.xlu0 %v1236_v7, %s1743_s24 }
0x1225   :  { %v1212_v23 = vpop.permute.xlu1 %1211 }
0x1226   :  { %v2226_v40 = vadd.f32 %v1212_v23, %v1204_v35 }
0x1227   :  { %v1239_v45 = vpop.permute.xlu0 %1238 }
0x1228   :  { %1719 = vtanh.f32 %v2226_v40  ;;  %v1241_v60 = vadd.f32 %v1239_v45, %v1231_v43  ;;  %v1464_v43 = vld [vmem:[%s2327_s4 + $0x38] sm:$0xff]  ;;  %v1462_v45 = vld [vmem:[%s2327_s4 + $0x28] sm:$0xff] }
0x1229   :  { %1589 = vmatpush3.msra.mxu1 %v1464_v43 }
0x122a   :  { %1721 = vtanh.f32 %v1241_v60  ;;  %v1391_v22 = vrot.slane %v1241_v60, 2  ;;  %1590 = vmatprep.subr.mxu1 %v1741_v3  ;;  %v1461_v60 = vld [vmem:[%s2327_s4 + $0x20] sm:$0xff] }
0x1235   :  { %v1720_v2 = vpop.eup %1719 }
0x1236   :  { %1217 = vrot.lane.b32.xlu1 %v1720_v2, %s1742_s2  ;;  %v1460_v2 = vld [vmem:[%s2327_s4 + $0x18] sm:$0xff] }
0x1237   :  { %v1722_v50 = vpop.eup %1721 }
0x1238   :  { %1244 = vrot.lane.b32.xlu0 %v1722_v50, %s1742_s2 }
0x12a8   :  { %v1218_v53 = vpop.permute.xlu1 %1217 }
0x12a9   :  { %v1220_v46 = vmul.f32 %v1716_v21, %v1218_v53  ;;  %v1364_v21 = vrot.slane %v2226_v40, 6  ;;  %v1463_v40 = vld [vmem:[%s2327_s4 + $0x30] sm:$0xff]  ;;  %v1094_v53 = vrot.slane %v2207_v59, 4 }
0x12aa   :  { %v1245_v41 = vpop.permute.xlu0 %1244  ;;  %1591 = vmatpush3.msra.mxu1 %v1463_v40 }
0x12ab   :  { %v1249_v39 = vrot.slane %v1220_v46, 4  ;;  %1268 = vrot.lane.b32.xlu0 %v1220_v46, %s1743_s24  ;;  %v2232_v52 = vmul.f32 %v1718_v25, %v1245_v41  ;;  %1592 = vmatprep.subr.mxu1 %v1741_v3  ;;  %v611_v46 = vrot.slane %v2071_v49, 2  ;;  %v446_v41 = vrot.slane %v2027_v32, 4 }
0x12ac   :  { %1593 = vmatpush3.msra.mxu1 %v1462_v45  ;;  %v284_v32 = vsel %vm273_vm2, %v282_v16, 0.0 }
0x12ad   :  { %v1251_v54 = vsel %vm273_vm2, %v1249_v39, 0.0  ;;  %v1271_v57 = vrot.slane %v2232_v52, 6  ;;  %1594 = vmatprep.subr.mxu1 %v1741_v3  ;;  %v1259_v50 = vrot.slane %v2232_v52, 2  ;;  %v613_v52 = vsel %vm273_vm2, %v611_v46, 0.0 }
0x12ae   :  { %v1252_v56 = vrot.slane %v1251_v54, 4  ;;  %1595 = vmatpush3.msra.mxu1 %v1461_v60  ;;  %v448_v59 = vsel %vm273_vm2, %v446_v41, 0.0 }
0x12af   :  { %1272 = vrot.lane.b32.xlu1 %v1271_v57, %s1742_s2  ;;  %1596 = vmatprep.subr.mxu1 %v1741_v3  ;;  %v1261_v39 = vsel %vm273_vm2, %v1259_v50, 0.0  ;;  %v772_v57 = vsel %vm273_vm2, %v2115_v55, 0.0  ;;  %v449_v11 = vrot.slane %v448_v59, 4 }
0x12b0   :  { %v1253_v61 = vadd.f32 %v1252_v56, %v1251_v54  ;;  %1597 = vmatpush3.msra.mxu1 %v1460_v2  ;;  %v1096_v54 = vsel %vm273_vm2, %v1094_v53, 0.0  ;;  %v932_v56 = vsel %vm273_vm2, %v930_v18, 0.0 }
0x12b1   :  { %1598 = vmatprep.subr.mxu1 %v1741_v3  ;;  %v933_v49 = vrot.slane %v932_v56, 4 }
0x12b2   :  { %v1254_v62 = vrot.slane %v1253_v61, 2 }
0x12b4   :  { %v1255_v5 = vadd.f32 %v1254_v62, %v1253_v61  ;;  %v1262_v61 = vrot.slane %v1261_v39, 4  ;;  %v1097_v62 = vrot.slane %v1096_v54, 4 }
0x12b6   :  { %v1256_v48 = vrot.slane %v1255_v5, 1 }
0x12b8   :  { %v1257_v47 = vadd.f32 %v1256_v48, %v1255_v5  ;;  %v773_v5 = vrot.slane %v772_v57, 4  ;;  %v614_v48 = vrot.slane %v613_v52, 4 }
0x12ba   :  { %v2239_v51 = vsel %vm1437_vm8, %v2214_v13, %v1257_v47  ;;  %v1263_v47 = vadd.f32 %v1262_v61, %v1261_v39 }
0x131d   :  { %v1269_v9 = vpop.permute.xlu0 %1268 }
0x1321   :  { %v1273_v63 = vpop.permute.xlu1 %1272 }
0x1322   :  { %v1275_v27 = vsel %vm45_vm0, %v1269_v9, %v1273_v63  ;;  %v1098_v9 = vadd.f32 %v1097_v62, %v1096_v54  ;;  %v285_v63 = vrot.slane %v284_v32, 4 }
0x1323   :  { %v1277_v58 = vrot.slane %v1275_v27, 4  ;;  %v934_v27 = vadd.f32 %v933_v49, %v932_v56 }
0x1324   :  { %v286_v16 = vadd.f32 %v285_v63, %v284_v32 }
0x1325   :  { %1575 = vmatmul.mubr.msk.f32.vlgmr.msra.gmra.mxu0 %vm145_vm1, %v1277_v58 }
0x13e5   :  { %v1346_v29 = vpop.f32.mrf.mxu0 }
0x13e6   :  { %v1352_v0 = vrot.slane %v1346_v29, 2  ;;  %v774_v29 = vadd.f32 %v773_v5, %v772_v57 }
0x13e7   :  { %v1348_v33 = vpop.f32.mrf.mxu0 }
0x13e8   :  { %v1354_v34 = vadd.f32 %v1352_v0, %v1959_v38  ;;  %v1355_v44 = vadd.f32 %v1348_v33, %v1957_v36  ;;  %v615_v33 = vadd.f32 %v614_v48, %v613_v52 }
0x13ea   :  { %1723 = vtanh.f32 %v1354_v34  ;;  %v1576_v13 = vmul.f32 -1.442695, %v1354_v34  ;;  %v1577_v6 = vmul.f32 -1.442695, %v1355_v44  ;;  %v1264_v34 = vrot.slane %v1263_v47, 2 }
0x13eb   :  { %1725 = vtanh.f32 %v1355_v44 }
0x13ec   :  { %1727 = vpow2.f32 %v1576_v13  ;;  %v935_v13 = vrot.slane %v934_v27, 2 }
0x13ed   :  { %1729 = vpow2.f32 %v1577_v6 }
0x13f7   :  { %v1724_v1 = vpop.eup %1723 }
0x13f8   :  { %v1726_v4 = vpop.eup %1725  ;;  %1368 = vrot.lane.b32.xlu1 %v1724_v1, %s1742_s2  ;;  %v450_v1 = vadd.f32 %v449_v11, %v448_v59 }
0x13f9   :  { %1395 = vrot.lane.b32.xlu0 %v1726_v4, %s1742_s2  ;;  %v1728_v8 = vpop.eup %1727  ;;  %v1099_v4 = vrot.slane %v1098_v9, 2 }
0x13fa   :  { %v1730_v30 = vpop.eup %1729  ;;  %v1359_v10 = vadd.f32 1.0, %v1728_v8 }
0x13fb   :  { %v1386_v12 = vadd.f32 1.0, %v1730_v30  ;;  %v1459_v30 = vld [vmem:[%s2327_s4 + $0x10] sm:$0xff] }
0x13fc   :  { %1731 = vrcp.f32 %v1359_v10  ;;  %v1458_v10 = vld [vmem:[%s2327_s4 + $0x8] sm:$0xff]  ;;  %1599 = vmatpush3.msra.mxu1 %v1459_v30 }
0x13fd   :  { %1733 = vrcp.f32 %v1386_v12  ;;  %v775_v12 = vrot.slane %v774_v29, 2  ;;  %1600 = vmatprep.subr.mxu1 %v1741_v3 }
0x13fe   :  { %1601 = vmatpush3.msra.mxu1 %v1458_v10 }
0x13ff   :  { %1602 = vmatprep.subr.mxu1 %v1741_v3 }
0x1409   :  { %v1732_v38 = vpop.eup %1731 }
0x140a   :  { %v1734_v15 = vpop.eup %1733  ;;  %v1366_v24 = vmul.f32 %v1732_v38, %v1364_v21 }
0x140b   :  { %v1393_v26 = vmul.f32 %v1734_v15, %v1391_v22  ;;  %v287_v22 = vrot.slane %v286_v16, 2 }
0x140d   :  { %v288_v60 = vadd.f32 %v287_v22, %v286_v16 }
0x140f   :  { %v289_v52 = vrot.slane %v288_v60, 1 }
0x146a   :  { %v1369_v36 = vpop.permute.xlu1 %1368 }
0x146b   :  { %v1371_v17 = vmul.f32 %v1732_v38, %v1369_v36  ;;  %v1396_v19 = vpop.permute.xlu0 %1395  ;;  %v616_v36 = vrot.slane %v615_v33, 2 }
0x146c   :  { %v1398_v20 = vmul.f32 %v1734_v15, %v1396_v19  ;;  %v451_v19 = vrot.slane %v450_v1, 2 }
0x146d   :  { %1373 = vrot.lane.b32.xlu1 %v1371_v17, %s1743_s24 }
0x146e   :  { %1400 = vrot.lane.b32.xlu0 %v1398_v20, %s1743_s24  ;;  %v1100_v20 = vadd.f32 %v1099_v4, %v1098_v9  ;;  %v452_v43 = vadd.f32 %v451_v19, %v450_v1  ;;  %v290_v9 = vadd.f32 %v289_v52, %v288_v60 }
0x1470   :  { %v1101_v40 = vrot.slane %v1100_v20, 1  ;;  %v453_v56 = vrot.slane %v452_v43, 1 }
0x1472   :  { %v1102_v57 = vadd.f32 %v1101_v40, %v1100_v20 }
0x14df   :  { %v1374_v25 = vpop.permute.xlu1 %1373 }
0x14e0   :  { %v1376_v7 = vadd.f32 %v1374_v25, %v1366_v24  ;;  %v1401_v42 = vpop.permute.xlu0 %1400  ;;  %v936_v24 = vadd.f32 %v935_v13, %v934_v27 }
0x14e1   :  { %v1403_v35 = vadd.f32 %v1401_v42, %v1393_v26  ;;  %v776_v26 = vadd.f32 %v775_v12, %v774_v29  ;;  %v1457_v42 = vld [vmem:[%s2327_s4] sm:$0xff] }
0x14e2   :  { %1735 = vtanh.f32 %v1376_v7  ;;  %1603 = vmatpush3.msra.mxu1 %v1457_v42  ;;  %v937_v2 = vrot.slane %v936_v24, 1  ;;  %v1465_v29 = vld [vmem:[%s2328_s5] sm:$0x1] }
0x14e3   :  { %1737 = vtanh.f32 %v1403_v35  ;;  %v617_v35 = vadd.f32 %v616_v36, %v615_v33  ;;  %v777_v53 = vrot.slane %v776_v26, 1 }
0x14e4   :  { %v938_v62 = vadd.f32 %v937_v2, %v936_v24 }
0x14e5   :  { %v618_v39 = vrot.slane %v617_v35, 1  ;;  %v778_v3 = vadd.f32 %v777_v53, %v776_v26 }
0x14e7   :  { %v619_v5 = vadd.f32 %v618_v39, %v617_v35 }
0x14ef   :  { %v1736_v37 = vpop.eup %1735 }
0x14f0   :  { %v1738_v23 = vpop.eup %1737  ;;  %1379 = vrot.lane.b32.xlu1 %v1736_v37, %s1742_s2 }
0x14f1   :  { %1406 = vrot.lane.b32.xlu0 %v1738_v23, %s1742_s2 }
0x1562   :  { %v1380_v18 = vpop.permute.xlu1 %1379 }
0x1563   :  { %v1382_v55 = vmul.f32 %v1732_v38, %v1380_v18  ;;  %v1407_v58 = vpop.permute.xlu0 %1406 }
0x1564   :  { %v1409_v0 = vmul.f32 %v1734_v15, %v1407_v58  ;;  %v1265_v15 = vadd.f32 %v1264_v34, %v1263_v47  ;;  %v454_v47 = vadd.f32 %v453_v56, %v452_v43 }
0x1565   :  { %v1411_v44 = vrot.slane %v1382_v55, 6 }
0x1566   :  { %v1420_v14 = vsel %vm273_vm2, %v1409_v0, 0.0  ;;  %v1266_v37 = vrot.slane %v1265_v15, 1  ;;  %v1466_v0 = vmul.f32 2.0, %v1465_v29 }
0x1567   :  { %v1413_v6 = vsel %vm273_vm2, %v1411_v44, 0.0  ;;  %v1421_v8 = vrot.slane %v1420_v14, 4 }
0x1568   :  { %v1414_v38 = vrot.slane %v1413_v6, 4  ;;  %v1267_v41 = vadd.f32 %v1266_v37, %v1265_v15  ;;  %v1471_v33 = vrot.slane %v1466_v0, %v37_v31 }
0x1569   :  { %v1422_v17 = vadd.f32 %v1421_v8, %v1420_v14 }
0x156a   :  { %v1415_v21 = vadd.f32 %v1414_v38, %v1413_v6 }
0x156b   :  { %v1423_v25 = vrot.slane %v1422_v17, 2 }
0x156c   :  { %v1416_v7 = vrot.slane %v1415_v21, 2 }
0x156d   :  { %v1424_v23 = vadd.f32 %v1423_v25, %v1422_v17 }
0x156e   :  { %v1417_v45 = vadd.f32 %v1416_v7, %v1415_v21 }
0x156f   :  { %v1425_v50 = vrot.slane %v1424_v23, 1 }
0x1570   :  { %v1418_v46 = vrot.slane %v1417_v45, 1 }
0x1571   :  { %v1426_v54 = vadd.f32 %v1425_v50, %v1424_v23 }
0x1572   :  { %v1419_v61 = vadd.f32 %v1418_v46, %v1417_v45 }
0x1573   :  { %v1441_v59 = vsel %vm1427_vm3, %v1426_v54, %v1267_v41 }
0x1574   :  { %v1440_v49 = vsel %vm1439_vm10, %v2239_v51, %v1419_v61  ;;  %v1442_v32 = vsel %vm1429_vm4, %v1441_v59, %v1102_v57 }
0x1575   :  { %1449 = vrot.lane.b32.xlu0 %v1440_v49, %s1743_s24  ;;  %v1443_v48 = vsel %vm1431_vm5, %v1442_v32, %v938_v62 }
0x1576   :  { %v1444_v11 = vsel %vm1433_vm6, %v1443_v48, %v778_v3 }
0x1577   :  { %v1445_v18 = vsel %vm1435_vm7, %v1444_v11, %v619_v5 }
0x1578   :  { %v1446_v63 = vsel %vm1437_vm8, %v1445_v18, %v454_v47 }
0x1579   :  { %v1447_v27 = vsel %vm1439_vm10, %v1446_v63, %v290_v9 }
0x157a   :  { %1453 = vrot.lane.b32.xlu1 %v1447_v27, %s1742_s2 }
0x15e7   :  { %v1450_v51 = vpop.permute.xlu0 %1449 }
0x15ec   :  { %v1454_v55 = vpop.permute.xlu1 %1453 }
0x15ed   :  { %v1456_v58 = vsel %vm45_vm0, %v1450_v51, %v1454_v55 }
0x15ee   :  { %1605 = vmatmul.mubr.msk.f32.vlgmr.msra.gmra.mxu1 %vm145_vm1, %v1456_v58 }
0x16ae   :  { %v1542_v34 = vpop.f32.mrf.mxu1 }
0x16af   :  { %v1543_v44 = vadd.f32 %v1542_v34, %v1471_v33 }
0x16b0   :  { %v1606_v1 = vpop.f32.mrf.mxu1 }
0x16b1   :  { %1739 = vtanh.f32 %v1543_v44 }
0x16be   :  { %v1740_v4 = vpop.eup %1739 }
0x16bf   :  { %1548 = vst.msk [vmem:[%s2329_s6] sm:$0xff] %vm1547_vm11, %v1740_v4 }

</bundles_post_ra>
